<compile_context>
chip_gen: v7x
topology: tpu7x:2x2x1
jax: 0.10.0
libtpu: 0.0.40
codegen_flags: <defaults>
</compile_context>

<pallas_src>
import math

import numpy as np
import jax
import jax.numpy as jnp
from jax import lax
from jax.experimental import pallas as pl
from jax.experimental.pallas import tpu as pltpu

# ----------------------------- configuration -------------------------------
IMG_H, IMG_W = 64, 64
NUM_CLASSES = 4
REG_MAX = 8
STRIDES = (8, 16)
BOX_GAIN, CLS_GAIN, DFL_GAIN = 7.5, 0.5, 1.5
TOPK = 10
ALPHA, BETA = 0.5, 6.0
ASSIGNER_EPS = 1e-9
IOU_EPS = 1e-7
NO = NUM_CLASSES + 4 * REG_MAX   # channels per prediction head
LANE = 128                       # TPU lane width; anchor axis is padded to this


# --------------------------- shared CIoU tracer -----------------------------
def _ciou(b1_x1, b1_y1, b1_x2, b1_y2, b2_x1, b2_y1, b2_x2, b2_y2, dat, *,
          approx, eps=IOU_EPS):
    """CIoU; dat = atan(w2/h2) - atan(w1/h1) precomputed outside (no arctan in
    Mosaic).  Only traced inside Pallas kernels.  approx=True routes the
    divisions to the EUP reciprocal (loss kernel only); approx=False uses exact
    division (assigner metric, where ^6 amplifies errors into discrete flips)."""
    w1 = b1_x2 - b1_x1
    h1 = b1_y2 - b1_y1 + eps
    w2 = b2_x2 - b2_x1
    h2 = b2_y2 - b2_y1 + eps
    inter = (jnp.maximum(jnp.minimum(b1_x2, b2_x2) - jnp.maximum(b1_x1, b2_x1), 0.0) *
             jnp.maximum(jnp.minimum(b1_y2, b2_y2) - jnp.maximum(b1_y1, b2_y1), 0.0))
    union = w1 * h1 + w2 * h2 - inter + eps
    cw = jnp.maximum(b1_x2, b2_x2) - jnp.minimum(b1_x1, b2_x1)
    ch = jnp.maximum(b1_y2, b2_y2) - jnp.minimum(b1_y1, b2_y1)
    c2 = cw * cw + ch * ch + eps
    dx = b2_x1 + b2_x2 - b1_x1 - b1_x2
    dy = b2_y1 + b2_y2 - b1_y1 - b1_y2
    rho2 = (dx * dx + dy * dy) * 0.25
    v = (4.0 / (math.pi ** 2)) * dat * dat
    if approx:
        iou = inter * pl.reciprocal(union, approx=True)
        alpha = v * pl.reciprocal(v - iou + (1.0 + eps), approx=True)
        return iou - (rho2 * pl.reciprocal(c2, approx=True) + v * alpha)
    iou = inter / union
    alpha = v / (v - iou + (1.0 + eps))
    return iou - (rho2 / c2 + v * alpha)


# =========================== Pallas kernel 1 ================================
# DFL decode + log-sum-exp: softmax expectation over reg_max bins, dist2bbox.
# pred_dist_lane: (B, 4, R, A)   (anchors lane-dense)
# anch_slab:      (8, A) rows [ax, ay, ax, ay, 0, 0, 0, 0]
# output:         (B, 8, A) rows [x1, y1, x2, y2, lse0, lse1, lse2, lse3]
#                 (boxes in anchor-cell units; one full-tile store)
def dfl_decode_and_lse(pred_dist_lane, anch_slab):
    B, _, R, A = pred_dist_lane.shape

    def kernel(pd_ref, anch_ref, out_ref):
        pd = pd_ref[...]                                     # (B, 4, R, A)
        anch = anch_ref[...]                                 # (8, A)
        iota = lax.broadcasted_iota(jnp.int32, (B, R, A), 1).astype(jnp.float32)
        rows, lses = [], []
        for k in range(4):                                   # static; dense (B,R,A) tiles
            xk = pd[:, k]                                    # (B, R, A)
            m = jnp.max(xk, axis=1, keepdims=True)
            e = jnp.exp(xk - m)
            s = jnp.sum(e, axis=1, keepdims=True)
            # exact division: the expected distance drives the assigner
            d = jnp.sum(e * iota, axis=1, keepdims=True) / s
            sign = -1.0 if k < 2 else 1.0                    # lt -> subtract, rb -> add
            rows.append(anch[k:k + 1, :] + sign * d)         # (B, 1, A)
            lses.append(m + jnp.log(s))                      # (B, 1, A)
        out_ref[...] = jnp.concatenate(rows + lses, axis=1)  # single (B,8,A) store

    return pl.pallas_call(
        kernel,
        out_shape=jax.ShapeDtypeStruct((B, 8, A), jnp.float32),
    )(pred_dist_lane, anch_slab)


# =========================== Pallas kernel 2 ================================
# Assigner metrics: pairwise CIoU(gt, pred) clamped & masked, plus the fused
# align_metric = score^alpha * overlap^beta (alpha=0.5, beta=6).
#   gt_slab:  (B, G, 8) lanes    [x1, y1, x2, y2, atan_gt, 0, 0, 0]
#   pd_slab:  (B, 8, A) sublanes [x1, y1, x2, y2, atan_pd, 0, 0, 0]
#   scores:   (B, G, A) sigmoid class score gathered at the gt label
#   valid:    (B, G, A) float mask = in_gt * gt_valid
# Exact divisions only (metric feeds top-k / argmax selection).
def assigner_metrics(gt_slab, pd_slab, bbox_scores, valid):
    B, G, _ = gt_slab.shape
    A = pd_slab.shape[-1]

    def kernel(gt_ref, pd_ref, sc_ref, vl_ref, ov_ref, al_ref):
        gt = gt_ref[...]                                     # (B, G, 8)
        pd = pd_ref[...]                                     # (B, 8, A)
        b1_x1 = gt[:, :, 0:1]; b1_y1 = gt[:, :, 1:2]         # (B, G, 1)
        b1_x2 = gt[:, :, 2:3]; b1_y2 = gt[:, :, 3:4]
        atg = gt[:, :, 4:5]
        b2_x1 = pd[:, 0:1, :]; b2_y1 = pd[:, 1:2, :]         # (B, 1, A)
        b2_x2 = pd[:, 2:3, :]; b2_y2 = pd[:, 3:4, :]
        atp = pd[:, 4:5, :]
        ciou = _ciou(b1_x1, b1_y1, b1_x2, b1_y2,
                     b2_x1, b2_y1, b2_x2, b2_y2,
                     atp - atg, approx=False)                # (B, G, A)
        vl = vl_ref[...]
        ov = jnp.where(vl > 0, jnp.maximum(ciou, 0.0), 0.0)
        sc = jnp.where(vl > 0, sc_ref[...], 0.0)
        ov2 = ov * ov
        ov_ref[...] = ov
        al_ref[...] = jnp.sqrt(sc) * (ov2 * ov2 * ov2)       # sc^0.5 * ov^6

    return pl.pallas_call(
        kernel,
        out_shape=(jax.ShapeDtypeStruct((B, G, A), jnp.float32),
                   jax.ShapeDtypeStruct((B, G, A), jnp.float32)),
    )(gt_slab, pd_slab, bbox_scores, valid)


# =========================== Pallas kernel 3 ================================
# Fused loss: BCE-with-logits sum + per-anchor CIoU + DFL cross-entropy,
# masked weighted sums -> three scalars in one SMEM output.
#   ps / ts : (B, C, A)     logits / target scores (lane-dense)
#   pd      : (B, 4, R, A)  DFL logits
#   boxlse  : (B, 8, A)     rows [x1, y1, x2, y2, lse0..lse3] from kernel 1
#   tb      : (B, 4, A)     target xyxy boxes in anchor units
#   side    : (B, 8, A) rows [weight, fg, atan_p, atan_t, ax, ay, lane_valid, 0]
def fused_det_loss(ps, ts, pd, boxlse, tb, side, reg_max):
    B, _, R, A = pd.shape
    rm1 = float(reg_max - 1)   # BboxLoss is constructed with reg_max - 1

    def kernel(ps_ref, ts_ref, pd_ref, bl_ref, tb_ref, side_ref, out_ref):
        sd = side_ref[...]                                   # (B, 8, A)
        wt = sd[:, 0:1, :]       # target_scores.sum(-1)
        fg = sd[:, 1:2, :]       # foreground mask (float)
        atp = sd[:, 2:3, :]      # atan(wp/hp)
        att = sd[:, 3:4, :]      # atan(wt/ht)
        ax = sd[:, 4:5, :]
        ay = sd[:, 5:6, :]
        lane_ok = sd[:, 6:7, :]  # 1.0 for real anchors, 0.0 for lane padding

        # ---------------- classification: BCE-with-logits sum ---------------
        x = ps_ref[...]
        y = ts_ref[...]
        bce = jnp.maximum(x, 0.0) - x * y + jnp.log(1.0 + jnp.exp(-jnp.abs(x)))
        out_ref[0] = jnp.sum(bce * lane_ok)                  # padded lanes masked

        bl = bl_ref[...]                                     # (B, 8, A)
        b1_x1 = bl[:, 0:1, :]; b1_y1 = bl[:, 1:2, :]
        b1_x2 = bl[:, 2:3, :]; b1_y2 = bl[:, 3:4, :]
        tbx = tb_ref[...]                                    # (B, 4, A)
        b2_x1 = tbx[:, 0:1, :]; b2_y1 = tbx[:, 1:2, :]
        b2_x2 = tbx[:, 2:3, :]; b2_y2 = tbx[:, 3:4, :]

        # ---------------- box loss: per-anchor CIoU --------------------------
        ciou = _ciou(b1_x1, b1_y1, b1_x2, b1_y2,
                     b2_x1, b2_y1, b2_x2, b2_y2,
                     att - atp, approx=True)                 # (B, 1, A)
        out_ref[1] = jnp.sum(jnp.where(fg > 0, (1.0 - ciou) * wt, 0.0))

        # ---------------- DFL: cross-entropy on soft target bins -------------
        pdist = pd_ref[...]                                  # (B, 4, R, A)
        iota = lax.broadcasted_iota(jnp.int32, (B, R, A), 1).astype(jnp.float32)
        tdists = (ax - b2_x1, ay - b2_y1, b2_x2 - ax, b2_y2 - ay)
        df_sum = jnp.zeros((B, 1, A), dtype=jnp.float32)
        for k in range(4):                                   # static; dense (B,R,A) tiles
            xk = pdist[:, k]                                 # (B, R, A)
            lse = bl[:, 4 + k:5 + k, :]                      # reused from kernel 1
            t = jnp.clip(tdists[k], 0.0, rm1 - 0.01)         # clip BEFORE floor (exact eq below)
            tl = jnp.floor(t)
            wl = (tl + 1.0) - t
            wr = 1.0 - wl
            # NOTE: exact f32 equality of floor() against iota is intentional —
            # bin indices are tiny integers (reg_max << 2^24), equality is exact.
            sel = (jnp.where(iota == tl, wl, 0.0) +
                   jnp.where(iota == tl + 1.0, wr, 0.0))     # (B, R, A)
            x_sel = jnp.sum(xk * sel, axis=1, keepdims=True) # one sublane reduction
            df_sum = df_sum + ((wl + wr) * lse - x_sel)
        df = df_sum * 0.25
        out_ref[2] = jnp.sum(jnp.where(fg > 0, df * wt, 0.0))

    out = pl.pallas_call(
        kernel,
        out_shape=jax.ShapeDtypeStruct((3,), jnp.float32),
        out_specs=pl.BlockSpec(memory_space=pltpu.SMEM),     # scalars skip vector-store path
    )(ps, ts, pd, boxlse, tb, side)
    return out[0], out[1], out[2]


# =========================== Pallas kernel 4 ================================
# Standalone BCE-with-logits sum (only used on the "no ground-truth" path).
# lane_mask: (1, 1, A) with 1.0 on real anchors, 0.0 on padded lanes.
def bce_with_logits_sum(logits, targets, lane_mask):
    def kernel(x_ref, y_ref, m_ref, out_ref):
        x = x_ref[...]
        y = y_ref[...]
        loss = jnp.maximum(x, 0.0) - x * y + jnp.log(1.0 + jnp.exp(-jnp.abs(x)))
        out_ref[0] = jnp.sum(loss * m_ref[...])

    out = pl.pallas_call(
        kernel,
        out_shape=jax.ShapeDtypeStruct((1,), jnp.float32),
        out_specs=pl.BlockSpec(memory_space=pltpu.SMEM),
    )(logits, targets, lane_mask)
    return out[0]


# ============================== JAX glue ====================================
def make_anchors(feat_shapes, strides, grid_cell_offset=0.5):
    anchor_points, stride_tensor = [], []
    for (h, w), s in zip(feat_shapes, strides):
        sx = jnp.arange(w, dtype=jnp.float32) + grid_cell_offset
        sy = jnp.arange(h, dtype=jnp.float32) + grid_cell_offset
        syy, sxx = jnp.meshgrid(sy, sx, indexing="ij")
        anchor_points.append(jnp.stack((sxx, syy), -1).reshape(-1, 2))
        stride_tensor.append(jnp.full((h * w, 1), float(s), dtype=jnp.float32))
    return jnp.concatenate(anchor_points), jnp.concatenate(stride_tensor)


def encode_gt_np(targets, batch_size, scale):
    """Host-side (data-dependent shapes): group targets per image, scale, xywh->xyxy."""
    if targets.shape[0] == 0:
        return np.zeros((batch_size, 0, 5), np.float32)
    img_idx = targets[:, 0].astype(np.int64)
    _, counts = np.unique(img_idx, return_counts=True)
    max_g = int(counts.max())
    out = np.zeros((batch_size, max_g, 5), np.float32)
    for j in range(batch_size):
        m = img_idx == j
        n = int(m.sum())
        if n:
            out[j, :n] = targets[m, 1:]
    box = out[..., 1:5] * scale[None, None, :]
    xy, wh = box[..., :2], box[..., 2:]
    out[..., 1:3] = xy - wh / 2.0
    out[..., 3:5] = xy + wh / 2.0
    return out


def task_aligned_assign(pd_scores_sig, pd_bboxes, anc_points, gt_labels, gt_bboxes, mask_gt):
    """TaskAlignedAssigner(topk=10, alpha=0.5, beta=6.0) forward semantics.
    Padded anchor lanes have anc_points=(0,0) so mask_in_gts is 0 there; they
    can never become foreground and end up with fg=0 / weight=0."""
    B, A, C = pd_scores_sig.shape
    G = gt_bboxes.shape[1]
    eps = ASSIGNER_EPS

    # select_candidates_in_gts
    ax = anc_points[None, None, :, 0]
    ay = anc_points[None, None, :, 1]
    gx1, gy1 = gt_bboxes[..., 0:1], gt_bboxes[..., 1:2]
    gx2, gy2 = gt_bboxes[..., 2:3], gt_bboxes[..., 3:4]
    deltas = jnp.stack([ax - gx1, ay - gy1, gx2 - ax, gy2 - ay], axis=-1)
    mask_in_gts = (jnp.min(deltas, axis=-1) > eps).astype(jnp.float32)   # (B,G,A)

    mask_gt_f = mask_gt.astype(jnp.float32)                              # (B,G,1)
    valid = mask_in_gts * mask_gt_f                                      # (B,G,A)

    # get_box_metrics: class-score gather (XLA) + Pallas kernel 2 (CIoU + align)
    labels = jnp.clip(gt_labels[..., 0].astype(jnp.int32), 0, C - 1)     # (B,G)
    bbox_scores = pd_scores_sig[jnp.arange(B)[:, None, None],
                                jnp.arange(A)[None, None, :],
                                labels[:, :, None]]                       # (B,G,A)

    wh_g = gt_bboxes[..., 2:4] - gt_bboxes[..., 0:2]
    wh_p = pd_bboxes[..., 2:4] - pd_bboxes[..., 0:2]
    atan_gt = jnp.arctan(wh_g[..., 0] / (wh_g[..., 1] + IOU_EPS))         # (B,G)
    atan_pd = jnp.arctan(wh_p[..., 0] / (wh_p[..., 1] + IOU_EPS))         # (B,A)
    gt_slab = jnp.concatenate(
        [gt_bboxes, atan_gt[..., None], jnp.zeros((B, G, 3), jnp.float32)], axis=-1)
    pd_slab = jnp.concatenate(
        [jnp.transpose(pd_bboxes, (0, 2, 1)), atan_pd[:, None, :],
         jnp.zeros((B, 3, A), jnp.float32)], axis=1)
    overlaps, align_metric = assigner_metrics(gt_slab, pd_slab, bbox_scores, valid)

    # select_topk_candidates
    _, topk_idxs = lax.top_k(align_metric, TOPK)                          # (B,G,TOPK)
    topk_mask = jnp.broadcast_to(mask_gt, (B, G, TOPK))
    topk_idxs = jnp.where(topk_mask, topk_idxs, 0)
    counts = jax.nn.one_hot(topk_idxs, A, dtype=jnp.int32).sum(axis=2)    # (B,G,A)
    counts = jnp.where(counts > 1, 0, counts)
    mask_topk = counts.astype(jnp.float32)

    mask_pos = mask_topk * mask_in_gts * mask_gt_f                        # (B,G,A)

    # select_highest_overlaps
    fg_counts = mask_pos.sum(axis=-2)                                     # (B,A)
    mask_multi = fg_counts[:, None, :] > 1
    max_ov_idx = jnp.argmax(overlaps, axis=1)                             # (B,A)
    is_max = (jnp.arange(G)[None, :, None] == max_ov_idx[:, None, :]).astype(jnp.float32)
    mask_pos = jnp.where(mask_multi, is_max, mask_pos)
    fg_counts = mask_pos.sum(axis=-2)
    target_gt_idx = jnp.argmax(mask_pos, axis=-2)                         # (B,A)

    # get_targets
    flat_idx = target_gt_idx + jnp.arange(B)[:, None] * G
    target_labels = jnp.maximum(gt_labels.reshape(-1).astype(jnp.int32)[flat_idx], 0)
    target_bboxes = gt_bboxes.reshape(-1, 4)[flat_idx]                    # (B,A,4)
    target_scores = jax.nn.one_hot(target_labels, C, dtype=jnp.float32)
    target_scores = jnp.where((fg_counts > 0)[..., None], target_scores, 0.0)

    # normalization of target scores
    align_metric = align_metric * mask_pos
    pos_align = jnp.max(align_metric, axis=-1, keepdims=True)
    pos_overlaps = jnp.max(overlaps * mask_pos, axis=-1, keepdims=True)
    norm_align = jnp.max(align_metric * pos_overlaps / (pos_align + eps), axis=-2)[..., None]
    target_scores = target_scores * norm_align

    return target_bboxes, target_scores, fg_counts > 0


@jax.jit
def _loss_core(feats, gt_labels, gt_bboxes):
    B = feats[0].shape[0]
    x = jnp.concatenate([jnp.reshape(f, (B, NO, -1)) for f in feats], axis=2)  # (B,NO,A)
    A = x.shape[-1]
    A_pad = ((A + LANE - 1) // LANE) * LANE
    pad = A_pad - A

    # Lane-dense layouts: anchors on the lane axis, padded to a 128 multiple.
    xp = jnp.pad(x, ((0, 0), (0, 0), (0, pad)))                                # zero-logit pad
    pred_dist_lane = xp[:, :4 * REG_MAX, :].astype(jnp.float32).reshape(B, 4, REG_MAX, A_pad)
    pred_scores_lane = xp[:, 4 * REG_MAX:, :].astype(jnp.float32)              # (B,C,A_pad)
    pred_scores = jnp.transpose(pred_scores_lane, (0, 2, 1))                   # (B,A_pad,C)

    feat_shapes = [(f.shape[2], f.shape[3]) for f in feats]
    anchor_points, stride_tensor = make_anchors(feat_shapes, STRIDES, 0.5)
    anchor_points = jnp.pad(anchor_points, ((0, pad), (0, 0)))                 # pad anchors at (0,0)
    stride_tensor = jnp.pad(stride_tensor, ((0, pad), (0, 0)), constant_values=1.0)
    lane_valid = (jnp.arange(A_pad) < A).astype(jnp.float32)                   # (A_pad,)

    axp = anchor_points[:, 0]
    ayp = anchor_points[:, 1]
    zrow = jnp.zeros_like(axp)
    anch_slab = jnp.stack([axp, ayp, axp, ayp, zrow, zrow, zrow, zrow], axis=0)  # (8,A_pad)

    mask_gt = gt_bboxes.sum(axis=2, keepdims=True) > 0

    # Pallas kernel 1: DFL decode + lse -> (B,8,A_pad)
    box_lse = dfl_decode_and_lse(pred_dist_lane, anch_slab)
    pred_bboxes_lane = box_lse[:, 0:4, :]                                      # (B,4,A_pad)
    pred_bboxes = jnp.transpose(pred_bboxes_lane, (0, 2, 1))                   # (B,A_pad,4)

    pd_scores_sig = jax.nn.sigmoid(pred_scores)
    pd_bboxes_strided = pred_bboxes * stride_tensor[None, :, :]
    anc_strided = anchor_points * stride_tensor

    target_bboxes, target_scores, fg_mask = task_aligned_assign(
        pd_scores_sig, pd_bboxes_strided, anc_strided, gt_labels, gt_bboxes, mask_gt)

    target_scores_sum = jnp.maximum(target_scores.sum(), 1.0)

    # ---- pack lane-dense inputs for the fused loss kernel ----
    target_scores_lane = jnp.transpose(target_scores, (0, 2, 1))               # (B,C,A_pad)
    target_bboxes_s = target_bboxes / stride_tensor[None, :, :]
    target_bboxes_lane = jnp.transpose(target_bboxes_s, (0, 2, 1))             # (B,4,A_pad)

    weight = target_scores.sum(-1)                                             # (B,A_pad)
    fg_f = fg_mask.astype(jnp.float32)                                         # (B,A_pad)
    wh_p = pred_bboxes[..., 2:4] - pred_bboxes[..., 0:2]
    wh_t = target_bboxes_s[..., 2:4] - target_bboxes_s[..., 0:2]
    atan_p = jnp.arctan(wh_p[..., 0] / (wh_p[..., 1] + IOU_EPS))               # (B,A_pad)
    atan_t = jnp.arctan(wh_t[..., 0] / (wh_t[..., 1] + IOU_EPS))               # (B,A_pad)
    axb = jnp.broadcast_to(axp[None, :], (B, A_pad))
    ayb = jnp.broadcast_to(ayp[None, :], (B, A_pad))
    lvb = jnp.broadcast_to(lane_valid[None, :], (B, A_pad))
    side_slab = jnp.stack([weight, fg_f, atan_p, atan_t, axb, ayb, lvb,
                           jnp.zeros_like(lvb)], axis=1)                       # (B,8,A_pad)

    # Pallas kernel 3: fused BCE + CIoU + DFL -> 3 scalars via SMEM
    lcls, liou, ldfl = fused_det_loss(
        pred_scores_lane, target_scores_lane, pred_dist_lane,
        box_lse, target_bboxes_lane, side_slab, REG_MAX)

    loss_cls = lcls / target_scores_sum
    has_fg = fg_mask.sum() > 0
    loss_box = jnp.where(has_fg, liou / target_scores_sum, 0.0)
    loss_dfl = jnp.where(has_fg, ldfl / target_scores_sum, 0.0)

    loss = jnp.stack([loss_box * BOX_GAIN, loss_cls * CLS_GAIN, loss_dfl * DFL_GAIN])
    return loss.sum(), loss


def detection_loss(feats, targets_np):
    """Top-level equivalent of DetectionLoss.forward(preds, targets)."""
    B = feats[0].shape[0]
    scale = np.array([IMG_W, IMG_H, IMG_W, IMG_H], np.float32)
    gt = encode_gt_np(np.asarray(targets_np, np.float32), B, scale)
    if gt.shape[1] == 0:
        # no ground-truth boxes at all: only the classification term survives
        x = jnp.concatenate([jnp.reshape(f, (B, NO, -1)) for f in feats], axis=2)
        A = x.shape[-1]
        A_pad = ((A + LANE - 1) // LANE) * LANE
        xp = jnp.pad(x, ((0, 0), (0, 0), (0, A_pad - A)))
        pred_scores_lane = xp[:, 4 * REG_MAX:, :].astype(jnp.float32)
        lane_mask = (jnp.arange(A_pad) < A).astype(jnp.float32)[None, None, :]
        loss_cls = bce_with_logits_sum(pred_scores_lane,
                                       jnp.zeros_like(pred_scores_lane), lane_mask)
        loss = jnp.stack([jnp.float32(0.0), loss_cls * CLS_GAIN, jnp.float32(0.0)])
        return loss.sum(), loss
    gt_labels = jnp.asarray(gt[..., :1])
    gt_bboxes = jnp.asarray(gt[..., 1:5])
    return _loss_core(tuple(feats), gt_labels, gt_bboxes)


# ================================ main ======================================
if __name__ == "__main__":
    B = 2
    key = jax.random.PRNGKey(0)
    k1, k2 = jax.random.split(key)
    # feature maps, NCHW like PyTorch: (B, no, H/s, W/s)
    feat0 = jax.random.normal(k1, (B, NO, IMG_H // STRIDES[0], IMG_W // STRIDES[0]),
                              dtype=jnp.float32)
    feat1 = jax.random.normal(k2, (B, NO, IMG_H // STRIDES[1], IMG_W // STRIDES[1]),
                              dtype=jnp.float32)
    # targets: [image_idx, class, cx, cy, w, h] (normalized), like YOLO labels
    targets = np.array([
        [0, 1, 0.50, 0.50, 0.30, 0.40],
        [0, 2, 0.25, 0.25, 0.20, 0.20],
        [1, 0, 0.60, 0.40, 0.50, 0.30],
        [1, 3, 0.30, 0.70, 0.20, 0.25],
        [1, 1, 0.75, 0.75, 0.15, 0.20],
    ], dtype=np.float32)

    total, loss_vec = detection_loss((feat0, feat1), targets)
    jax.block_until_ready((total, loss_vec))
    print("KERNEL_OK")
</pallas_src>

<mosaic_0001>
module attributes {stable_mosaic.version = 11 : i64} {
  func.func @kernel(%arg0: memref<2x4x8x128xf32, #tpu.memory_space<vmem>>, %arg1: memref<8x128xf32, #tpu.memory_space<vmem>>, %arg2: memref<2x8x128xf32, #tpu.memory_space<vmem>>) attributes {dimension_semantics = [], scalar_prefetch = 0 : i64, scratch_operands = 0 : i64, tpu.core_type = #tpu.core_type<tc>} {
    %c0 = arith.constant 0 : index
    %c0_0 = arith.constant 0 : index
    %c0_1 = arith.constant 0 : index
    %c0_2 = arith.constant 0 : index
    %0 = vector.load %arg0[%c0, %c0_0, %c0_1, %c0_2] : memref<2x4x8x128xf32, #tpu.memory_space<vmem>>, vector<2x4x8x128xf32>
    %c0_3 = arith.constant 0 : index
    %c0_4 = arith.constant 0 : index
    %1 = vector.load %arg1[%c0_3, %c0_4] : memref<8x128xf32, #tpu.memory_space<vmem>>, vector<8x128xf32>
    %2 = tpu.iota {dimensions = array<i32: 1>} : vector<2x8x128xi32>
    %3 = arith.sitofp %2 : vector<2x8x128xi32> to vector<2x8x128xf32>
    %4 = vector.extract_strided_slice %0 {offsets = [0, 0, 0, 0], sizes = [2, 1, 8, 128], strides = [1, 1, 1, 1]} : vector<2x4x8x128xf32> to vector<2x1x8x128xf32>
    %5 = vector.shape_cast %4 : vector<2x1x8x128xf32> to vector<2x8x128xf32>
    %cst = arith.constant dense<0xFF800000> : vector<2x128xf32>
    %6 = vector.multi_reduction <maximumf>, %5, %cst [1] : vector<2x8x128xf32> to vector<2x128xf32>
    %7 = vector.shape_cast %6 : vector<2x128xf32> to vector<2x1x128xf32>
    %8 = vector.broadcast %7 : vector<2x1x128xf32> to vector<2x8x128xf32>
    %9 = arith.subf %5, %8 : vector<2x8x128xf32>
    %10 = math.exp %9 : vector<2x8x128xf32>
    %cst_5 = arith.constant dense<0.000000e+00> : vector<2x128xf32>
    %11 = vector.multi_reduction <add>, %10, %cst_5 [1] : vector<2x8x128xf32> to vector<2x128xf32>
    %12 = vector.shape_cast %11 : vector<2x128xf32> to vector<2x1x128xf32>
    %13 = arith.mulf %10, %3 : vector<2x8x128xf32>
    %cst_6 = arith.constant dense<0.000000e+00> : vector<2x128xf32>
    %14 = vector.multi_reduction <add>, %13, %cst_6 [1] : vector<2x8x128xf32> to vector<2x128xf32>
    %15 = vector.shape_cast %14 : vector<2x128xf32> to vector<2x1x128xf32>
    %16 = arith.divf %15, %12 : vector<2x1x128xf32>
    %17 = vector.extract_strided_slice %1 {offsets = [0, 0], sizes = [1, 128], strides = [1, 1]} : vector<8x128xf32> to vector<1x128xf32>
    %cst_7 = arith.constant -1.000000e+00 : f32
    %18 = vector.broadcast %cst_7 : f32 to vector<2x1x128xf32>
    %19 = arith.mulf %18, %16 : vector<2x1x128xf32>
    %20 = vector.shape_cast %17 : vector<1x128xf32> to vector<1x1x128xf32>
    %21 = vector.broadcast %20 : vector<1x1x128xf32> to vector<2x1x128xf32>
    %22 = arith.addf %21, %19 : vector<2x1x128xf32>
    %23 = math.log %12 : vector<2x1x128xf32>
    %24 = arith.addf %7, %23 : vector<2x1x128xf32>
    %25 = vector.extract_strided_slice %0 {offsets = [0, 1, 0, 0], sizes = [2, 1, 8, 128], strides = [1, 1, 1, 1]} : vector<2x4x8x128xf32> to vector<2x1x8x128xf32>
    %26 = vector.shape_cast %25 : vector<2x1x8x128xf32> to vector<2x8x128xf32>
    %cst_8 = arith.constant dense<0xFF800000> : vector<2x128xf32>
    %27 = vector.multi_reduction <maximumf>, %26, %cst_8 [1] : vector<2x8x128xf32> to vector<2x128xf32>
    %28 = vector.shape_cast %27 : vector<2x128xf32> to vector<2x1x128xf32>
    %29 = vector.broadcast %28 : vector<2x1x128xf32> to vector<2x8x128xf32>
    %30 = arith.subf %26, %29 : vector<2x8x128xf32>
    %31 = math.exp %30 : vector<2x8x128xf32>
    %cst_9 = arith.constant dense<0.000000e+00> : vector<2x128xf32>
    %32 = vector.multi_reduction <add>, %31, %cst_9 [1] : vector<2x8x128xf32> to vector<2x128xf32>
    %33 = vector.shape_cast %32 : vector<2x128xf32> to vector<2x1x128xf32>
    %34 = arith.mulf %31, %3 : vector<2x8x128xf32>
    %cst_10 = arith.constant dense<0.000000e+00> : vector<2x128xf32>
    %35 = vector.multi_reduction <add>, %34, %cst_10 [1] : vector<2x8x128xf32> to vector<2x128xf32>
    %36 = vector.shape_cast %35 : vector<2x128xf32> to vector<2x1x128xf32>
    %37 = arith.divf %36, %33 : vector<2x1x128xf32>
    %38 = vector.extract_strided_slice %1 {offsets = [1, 0], sizes = [1, 128], strides = [1, 1]} : vector<8x128xf32> to vector<1x128xf32>
    %cst_11 = arith.constant -1.000000e+00 : f32
    %39 = vector.broadcast %cst_11 : f32 to vector<2x1x128xf32>
    %40 = arith.mulf %39, %37 : vector<2x1x128xf32>
    %41 = vector.shape_cast %38 : vector<1x128xf32> to vector<1x1x128xf32>
    %42 = vector.broadcast %41 : vector<1x1x128xf32> to vector<2x1x128xf32>
    %43 = arith.addf %42, %40 : vector<2x1x128xf32>
    %44 = math.log %33 : vector<2x1x128xf32>
    %45 = arith.addf %28, %44 : vector<2x1x128xf32>
    %46 = vector.extract_strided_slice %0 {offsets = [0, 2, 0, 0], sizes = [2, 1, 8, 128], strides = [1, 1, 1, 1]} : vector<2x4x8x128xf32> to vector<2x1x8x128xf32>
    %47 = vector.shape_cast %46 : vector<2x1x8x128xf32> to vector<2x8x128xf32>
    %cst_12 = arith.constant dense<0xFF800000> : vector<2x128xf32>
    %48 = vector.multi_reduction <maximumf>, %47, %cst_12 [1] : vector<2x8x128xf32> to vector<2x128xf32>
    %49 = vector.shape_cast %48 : vector<2x128xf32> to vector<2x1x128xf32>
    %50 = vector.broadcast %49 : vector<2x1x128xf32> to vector<2x8x128xf32>
    %51 = arith.subf %47, %50 : vector<2x8x128xf32>
    %52 = math.exp %51 : vector<2x8x128xf32>
    %cst_13 = arith.constant dense<0.000000e+00> : vector<2x128xf32>
    %53 = vector.multi_reduction <add>, %52, %cst_13 [1] : vector<2x8x128xf32> to vector<2x128xf32>
    %54 = vector.shape_cast %53 : vector<2x128xf32> to vector<2x1x128xf32>
    %55 = arith.mulf %52, %3 : vector<2x8x128xf32>
    %cst_14 = arith.constant dense<0.000000e+00> : vector<2x128xf32>
    %56 = vector.multi_reduction <add>, %55, %cst_14 [1] : vector<2x8x128xf32> to vector<2x128xf32>
    %57 = vector.shape_cast %56 : vector<2x128xf32> to vector<2x1x128xf32>
    %58 = arith.divf %57, %54 : vector<2x1x128xf32>
    %59 = vector.extract_strided_slice %1 {offsets = [2, 0], sizes = [1, 128], strides = [1, 1]} : vector<8x128xf32> to vector<1x128xf32>
    %cst_15 = arith.constant 1.000000e+00 : f32
    %60 = vector.broadcast %cst_15 : f32 to vector<2x1x128xf32>
    %61 = arith.mulf %60, %58 : vector<2x1x128xf32>
    %62 = vector.shape_cast %59 : vector<1x128xf32> to vector<1x1x128xf32>
    %63 = vector.broadcast %62 : vector<1x1x128xf32> to vector<2x1x128xf32>
    %64 = arith.addf %63, %61 : vector<2x1x128xf32>
    %65 = math.log %54 : vector<2x1x128xf32>
    %66 = arith.addf %49, %65 : vector<2x1x128xf32>
    %67 = vector.extract_strided_slice %0 {offsets = [0, 3, 0, 0], sizes = [2, 1, 8, 128], strides = [1, 1, 1, 1]} : vector<2x4x8x128xf32> to vector<2x1x8x128xf32>
    %68 = vector.shape_cast %67 : vector<2x1x8x128xf32> to vector<2x8x128xf32>
    %cst_16 = arith.constant dense<0xFF800000> : vector<2x128xf32>
    %69 = vector.multi_reduction <maximumf>, %68, %cst_16 [1] : vector<2x8x128xf32> to vector<2x128xf32>
    %70 = vector.shape_cast %69 : vector<2x128xf32> to vector<2x1x128xf32>
    %71 = vector.broadcast %70 : vector<2x1x128xf32> to vector<2x8x128xf32>
    %72 = arith.subf %68, %71 : vector<2x8x128xf32>
    %73 = math.exp %72 : vector<2x8x128xf32>
    %cst_17 = arith.constant dense<0.000000e+00> : vector<2x128xf32>
    %74 = vector.multi_reduction <add>, %73, %cst_17 [1] : vector<2x8x128xf32> to vector<2x128xf32>
    %75 = vector.shape_cast %74 : vector<2x128xf32> to vector<2x1x128xf32>
    %76 = arith.mulf %73, %3 : vector<2x8x128xf32>
    %cst_18 = arith.constant dense<0.000000e+00> : vector<2x128xf32>
    %77 = vector.multi_reduction <add>, %76, %cst_18 [1] : vector<2x8x128xf32> to vector<2x128xf32>
    %78 = vector.shape_cast %77 : vector<2x128xf32> to vector<2x1x128xf32>
    %79 = arith.divf %78, %75 : vector<2x1x128xf32>
    %80 = vector.extract_strided_slice %1 {offsets = [3, 0], sizes = [1, 128], strides = [1, 1]} : vector<8x128xf32> to vector<1x128xf32>
    %cst_19 = arith.constant 1.000000e+00 : f32
    %81 = vector.broadcast %cst_19 : f32 to vector<2x1x128xf32>
    %82 = arith.mulf %81, %79 : vector<2x1x128xf32>
    %83 = vector.shape_cast %80 : vector<1x128xf32> to vector<1x1x128xf32>
    %84 = vector.broadcast %83 : vector<1x1x128xf32> to vector<2x1x128xf32>
    %85 = arith.addf %84, %82 : vector<2x1x128xf32>
    %86 = math.log %75 : vector<2x1x128xf32>
    %87 = arith.addf %70, %86 : vector<2x1x128xf32>
    %88 = tpu.concatenate %22, %43, %64, %85, %24, %45, %66, %87 in 1 : vector<2x1x128xf32>, vector<2x1x128xf32>, vector<2x1x128xf32>, vector<2x1x128xf32>, vector<2x1x128xf32>, vector<2x1x128xf32>, vector<2x1x128xf32>, vector<2x1x128xf32> -> vector<2x8x128xf32>
    %c0_20 = arith.constant 0 : index
    %c0_21 = arith.constant 0 : index
    %c0_22 = arith.constant 0 : index
    %89 = vector.load %arg2[%c0_20, %c0_21, %c0_22] : memref<2x8x128xf32, #tpu.memory_space<vmem>>, vector<2x8x128xf32>
    tpu.vector_store %arg2[%c0_20, %c0_21, %c0_22], %88 {strides = array<i32>} : memref<2x8x128xf32, #tpu.memory_space<vmem>>, vector<2x8x128xf32>,
    return
  }
}

module attributes {stable_mosaic.version = 11 : i64} {
  func.func @kernel(%arg0: memref<2x3x8xf32, #tpu.memory_space<vmem>>, %arg1: memref<2x8x128xf32, #tpu.memory_space<vmem>>, %arg2: memref<2x3x128xf32, #tpu.memory_space<vmem>>, %arg3: memref<2x3x128xf32, #tpu.memory_space<vmem>>, %arg4: memref<2x3x128xf32, #tpu.memory_space<vmem>>, %arg5: memref<2x3x128xf32, #tpu.memory_space<vmem>>) attributes {dimension_semantics = [], scalar_prefetch = 0 : i64, scratch_operands = 0 : i64, tpu.core_type = #tpu.core_type<tc>} {
    %c0 = arith.constant 0 : index
    %c0_0 = arith.constant 0 : index
    %c0_1 = arith.constant 0 : index
    %0 = vector.load %arg0[%c0, %c0_0, %c0_1] : memref<2x3x8xf32, #tpu.memory_space<vmem>>, vector<2x3x8xf32>
    %c0_2 = arith.constant 0 : index
    %c0_3 = arith.constant 0 : index
    %c0_4 = arith.constant 0 : index
    %1 = vector.load %arg1[%c0_2, %c0_3, %c0_4] : memref<2x8x128xf32, #tpu.memory_space<vmem>>, vector<2x8x128xf32>
    %2 = vector.extract_strided_slice %0 {offsets = [0, 0, 0], sizes = [2, 3, 1], strides = [1, 1, 1]} : vector<2x3x8xf32> to vector<2x3x1xf32>
    %3 = vector.extract_strided_slice %0 {offsets = [0, 0, 1], sizes = [2, 3, 1], strides = [1, 1, 1]} : vector<2x3x8xf32> to vector<2x3x1xf32>
    %4 = vector.extract_strided_slice %0 {offsets = [0, 0, 2], sizes = [2, 3, 1], strides = [1, 1, 1]} : vector<2x3x8xf32> to vector<2x3x1xf32>
    %5 = vector.extract_strided_slice %0 {offsets = [0, 0, 3], sizes = [2, 3, 1], strides = [1, 1, 1]} : vector<2x3x8xf32> to vector<2x3x1xf32>
    %6 = vector.extract_strided_slice %0 {offsets = [0, 0, 4], sizes = [2, 3, 1], strides = [1, 1, 1]} : vector<2x3x8xf32> to vector<2x3x1xf32>
    %7 = vector.extract_strided_slice %1 {offsets = [0, 0, 0], sizes = [2, 1, 128], strides = [1, 1, 1]} : vector<2x8x128xf32> to vector<2x1x128xf32>
    %8 = vector.extract_strided_slice %1 {offsets = [0, 1, 0], sizes = [2, 1, 128], strides = [1, 1, 1]} : vector<2x8x128xf32> to vector<2x1x128xf32>
    %9 = vector.extract_strided_slice %1 {offsets = [0, 2, 0], sizes = [2, 1, 128], strides = [1, 1, 1]} : vector<2x8x128xf32> to vector<2x1x128xf32>
    %10 = vector.extract_strided_slice %1 {offsets = [0, 3, 0], sizes = [2, 1, 128], strides = [1, 1, 1]} : vector<2x8x128xf32> to vector<2x1x128xf32>
    %11 = vector.extract_strided_slice %1 {offsets = [0, 4, 0], sizes = [2, 1, 128], strides = [1, 1, 1]} : vector<2x8x128xf32> to vector<2x1x128xf32>
    %12 = vector.broadcast %11 : vector<2x1x128xf32> to vector<2x3x128xf32>
    %13 = vector.broadcast %6 : vector<2x3x1xf32> to vector<2x3x128xf32>
    %14 = arith.subf %12, %13 : vector<2x3x128xf32>
    %15 = arith.subf %4, %2 : vector<2x3x1xf32>
    %16 = arith.subf %5, %3 : vector<2x3x1xf32>
    %cst = arith.constant 1.000000e-07 : f32
    %17 = vector.broadcast %cst : f32 to vector<2x3x1xf32>
    %18 = arith.addf %16, %17 : vector<2x3x1xf32>
    %19 = arith.subf %9, %7 : vector<2x1x128xf32>
    %20 = arith.subf %10, %8 : vector<2x1x128xf32>
    %cst_5 = arith.constant 1.000000e-07 : f32
    %21 = vector.broadcast %cst_5 : f32 to vector<2x1x128xf32>
    %22 = arith.addf %20, %21 : vector<2x1x128xf32>
    %23 = vector.broadcast %4 : vector<2x3x1xf32> to vector<2x3x128xf32>
    %24 = vector.broadcast %9 : vector<2x1x128xf32> to vector<2x3x128xf32>
    %25 = arith.minimumf %23, %24 : vector<2x3x128xf32>
    %26 = vector.broadcast %2 : vector<2x3x1xf32> to vector<2x3x128xf32>
    %27 = vector.broadcast %7 : vector<2x1x128xf32> to vector<2x3x128xf32>
    %28 = arith.maximumf %26, %27 : vector<2x3x128xf32>
    %29 = arith.subf %25, %28 : vector<2x3x128xf32>
    %cst_6 = arith.constant 0.000000e+00 : f32
    %30 = vector.broadcast %cst_6 : f32 to vector<2x3x128xf32>
    %31 = arith.maximumf %29, %30 : vector<2x3x128xf32>
    %32 = vector.broadcast %5 : vector<2x3x1xf32> to vector<2x3x128xf32>
    %33 = vector.broadcast %10 : vector<2x1x128xf32> to vector<2x3x128xf32>
    %34 = arith.minimumf %32, %33 : vector<2x3x128xf32>
    %35 = vector.broadcast %3 : vector<2x3x1xf32> to vector<2x3x128xf32>
    %36 = vector.broadcast %8 : vector<2x1x128xf32> to vector<2x3x128xf32>
    %37 = arith.maximumf %35, %36 : vector<2x3x128xf32>
    %38 = arith.subf %34, %37 : vector<2x3x128xf32>
    %cst_7 = arith.constant 0.000000e+00 : f32
    %39 = vector.broadcast %cst_7 : f32 to vector<2x3x128xf32>
    %40 = arith.maximumf %38, %39 : vector<2x3x128xf32>
    %41 = arith.mulf %31, %40 : vector<2x3x128xf32>
    %42 = arith.mulf %15, %18 : vector<2x3x1xf32>
    %43 = arith.mulf %19, %22 : vector<2x1x128xf32>
    %44 = vector.broadcast %42 : vector<2x3x1xf32> to vector<2x3x128xf32>
    %45 = vector.broadcast %43 : vector<2x1x128xf32> to vector<2x3x128xf32>
    %46 = arith.addf %44, %45 : vector<2x3x128xf32>
    %47 = arith.subf %46, %41 : vector<2x3x128xf32>
    %cst_8 = arith.constant 1.000000e-07 : f32
    %48 = vector.broadcast %cst_8 : f32 to vector<2x3x128xf32>
    %49 = arith.addf %47, %48 : vector<2x3x128xf32>
    %50 = vector.broadcast %4 : vector<2x3x1xf32> to vector<2x3x128xf32>
    %51 = vector.broadcast %9 : vector<2x1x128xf32> to vector<2x3x128xf32>
    %52 = arith.maximumf %50, %51 : vector<2x3x128xf32>
    %53 = vector.broadcast %2 : vector<2x3x1xf32> to vector<2x3x128xf32>
    %54 = vector.broadcast %7 : vector<2x1x128xf32> to vector<2x3x128xf32>
    %55 = arith.minimumf %53, %54 : vector<2x3x128xf32>
    %56 = arith.subf %52, %55 : vector<2x3x128xf32>
    %57 = vector.broadcast %5 : vector<2x3x1xf32> to vector<2x3x128xf32>
    %58 = vector.broadcast %10 : vector<2x1x128xf32> to vector<2x3x128xf32>
    %59 = arith.maximumf %57, %58 : vector<2x3x128xf32>
    %60 = vector.broadcast %3 : vector<2x3x1xf32> to vector<2x3x128xf32>
    %61 = vector.broadcast %8 : vector<2x1x128xf32> to vector<2x3x128xf32>
    %62 = arith.minimumf %60, %61 : vector<2x3x128xf32>
    %63 = arith.subf %59, %62 : vector<2x3x128xf32>
    %64 = arith.mulf %56, %56 : vector<2x3x128xf32>
    %65 = arith.mulf %63, %63 : vector<2x3x128xf32>
    %66 = arith.addf %64, %65 : vector<2x3x128xf32>
    %cst_9 = arith.constant 1.000000e-07 : f32
    %67 = vector.broadcast %cst_9 : f32 to vector<2x3x128xf32>
    %68 = arith.addf %66, %67 : vector<2x3x128xf32>
    %69 = arith.addf %7, %9 : vector<2x1x128xf32>
    %70 = vector.broadcast %69 : vector<2x1x128xf32> to vector<2x3x128xf32>
    %71 = vector.broadcast %2 : vector<2x3x1xf32> to vector<2x3x128xf32>
    %72 = arith.subf %70, %71 : vector<2x3x128xf32>
    %73 = vector.broadcast %4 : vector<2x3x1xf32> to vector<2x3x128xf32>
    %74 = arith.subf %72, %73 : vector<2x3x128xf32>
    %75 = arith.addf %8, %10 : vector<2x1x128xf32>
    %76 = vector.broadcast %75 : vector<2x1x128xf32> to vector<2x3x128xf32>
    %77 = vector.broadcast %3 : vector<2x3x1xf32> to vector<2x3x128xf32>
    %78 = arith.subf %76, %77 : vector<2x3x128xf32>
    %79 = vector.broadcast %5 : vector<2x3x1xf32> to vector<2x3x128xf32>
    %80 = arith.subf %78, %79 : vector<2x3x128xf32>
    %81 = arith.mulf %74, %74 : vector<2x3x128xf32>
    %82 = arith.mulf %80, %80 : vector<2x3x128xf32>
    %83 = arith.addf %81, %82 : vector<2x3x128xf32>
    %cst_10 = arith.constant 2.500000e-01 : f32
    %84 = vector.broadcast %cst_10 : f32 to vector<2x3x128xf32>
    %85 = arith.mulf %83, %84 : vector<2x3x128xf32>
    %cst_11 = arith.constant 0.405284733 : f32
    %86 = vector.broadcast %cst_11 : f32 to vector<2x3x128xf32>
    %87 = arith.mulf %86, %14 : vector<2x3x128xf32>
    %88 = arith.mulf %87, %14 : vector<2x3x128xf32>
    %89 = arith.divf %41, %49 : vector<2x3x128xf32>
    %90 = arith.subf %88, %89 : vector<2x3x128xf32>
    %cst_12 = arith.constant 1.00000012 : f32
    %91 = vector.broadcast %cst_12 : f32 to vector<2x3x128xf32>
    %92 = arith.addf %90, %91 : vector<2x3x128xf32>
    %93 = arith.divf %88, %92 : vector<2x3x128xf32>
    %94 = arith.divf %85, %68 : vector<2x3x128xf32>
    %95 = arith.mulf %88, %93 : vector<2x3x128xf32>
    %96 = arith.addf %94, %95 : vector<2x3x128xf32>
    %97 = arith.subf %89, %96 : vector<2x3x128xf32>
    %c0_13 = arith.constant 0 : index
    %c0_14 = arith.constant 0 : index
    %c0_15 = arith.constant 0 : index
    %98 = vector.load %arg3[%c0_13, %c0_14, %c0_15] : memref<2x3x128xf32, #tpu.memory_space<vmem>>, vector<2x3x128xf32>
    %cst_16 = arith.constant 0.000000e+00 : f32
    %99 = vector.broadcast %cst_16 : f32 to vector<2x3x128xf32>
    %100 = arith.cmpf ogt, %98, %99 : vector<2x3x128xf32>
    %cst_17 = arith.constant 0.000000e+00 : f32
    %101 = vector.broadcast %cst_17 : f32 to vector<2x3x128xf32>
    %102 = arith.maximumf %97, %101 : vector<2x3x128xf32>
    %cst_18 = arith.constant 0.000000e+00 : f32
    %103 = vector.broadcast %cst_18 : f32 to vector<2x3x128xf32>
    %104 = arith.select %100, %102, %103 : vector<2x3x128xi1>, vector<2x3x128xf32>
    %cst_19 = arith.constant 0.000000e+00 : f32
    %105 = vector.broadcast %cst_19 : f32 to vector<2x3x128xf32>
    %106 = arith.cmpf ogt, %98, %105 : vector<2x3x128xf32>
    %c0_20 = arith.constant 0 : index
    %c0_21 = arith.constant 0 : index
    %c0_22 = arith.constant 0 : index
    %107 = vector.load %arg2[%c0_20, %c0_21, %c0_22] : memref<2x3x128xf32, #tpu.memory_space<vmem>>, vector<2x3x128xf32>
    %cst_23 = arith.constant 0.000000e+00 : f32
    %108 = vector.broadcast %cst_23 : f32 to vector<2x3x128xf32>
    %109 = arith.select %106, %107, %108 : vector<2x3x128xi1>, vector<2x3x128xf32>
    %110 = arith.mulf %104, %104 : vector<2x3x128xf32>
    %c0_24 = arith.constant 0 : index
    %c0_25 = arith.constant 0 : index
    %c0_26 = arith.constant 0 : index
    %111 = vector.load %arg4[%c0_24, %c0_25, %c0_26] : memref<2x3x128xf32, #tpu.memory_space<vmem>>, vector<2x3x128xf32>
    tpu.vector_store %arg4[%c0_24, %c0_25, %c0_26], %104 {strides = array<i32>} : memref<2x3x128xf32, #tpu.memory_space<vmem>>, vector<2x3x128xf32>,
    %112 = math.sqrt %109 : vector<2x3x128xf32>
    %113 = arith.mulf %110, %110 : vector<2x3x128xf32>
    %114 = arith.mulf %113, %110 : vector<2x3x128xf32>
    %115 = arith.mulf %112, %114 : vector<2x3x128xf32>
    %c0_27 = arith.constant 0 : index
    %c0_28 = arith.constant 0 : index
    %c0_29 = arith.constant 0 : index
    %116 = vector.load %arg5[%c0_27, %c0_28, %c0_29] : memref<2x3x128xf32, #tpu.memory_space<vmem>>, vector<2x3x128xf32>
    tpu.vector_store %arg5[%c0_27, %c0_28, %c0_29], %115 {strides = array<i32>} : memref<2x3x128xf32, #tpu.memory_space<vmem>>, vector<2x3x128xf32>,
    return
  }
}

module attributes {stable_mosaic.version = 11 : i64} {
  func.func @kernel(%arg0: memref<2x4x128xf32, #tpu.memory_space<vmem>>, %arg1: memref<2x4x128xf32, #tpu.memory_space<vmem>>, %arg2: memref<2x4x8x128xf32, #tpu.memory_space<vmem>>, %arg3: memref<2x8x128xf32, #tpu.memory_space<vmem>>, %arg4: memref<2x4x128xf32, #tpu.memory_space<vmem>>, %arg5: memref<2x8x128xf32, #tpu.memory_space<vmem>>, %arg6: memref<3xf32, #tpu.memory_space<smem>>) attributes {dimension_semantics = [], scalar_prefetch = 0 : i64, scratch_operands = 0 : i64, tpu.core_type = #tpu.core_type<tc>} {
    %c0 = arith.constant 0 : index
    %c0_0 = arith.constant 0 : index
    %c0_1 = arith.constant 0 : index
    %0 = vector.load %arg5[%c0, %c0_0, %c0_1] : memref<2x8x128xf32, #tpu.memory_space<vmem>>, vector<2x8x128xf32>
    %1 = vector.extract_strided_slice %0 {offsets = [0, 0, 0], sizes = [2, 1, 128], strides = [1, 1, 1]} : vector<2x8x128xf32> to vector<2x1x128xf32>
    %2 = vector.extract_strided_slice %0 {offsets = [0, 1, 0], sizes = [2, 1, 128], strides = [1, 1, 1]} : vector<2x8x128xf32> to vector<2x1x128xf32>
    %3 = vector.extract_strided_slice %0 {offsets = [0, 2, 0], sizes = [2, 1, 128], strides = [1, 1, 1]} : vector<2x8x128xf32> to vector<2x1x128xf32>
    %4 = vector.extract_strided_slice %0 {offsets = [0, 3, 0], sizes = [2, 1, 128], strides = [1, 1, 1]} : vector<2x8x128xf32> to vector<2x1x128xf32>
    %5 = vector.extract_strided_slice %0 {offsets = [0, 4, 0], sizes = [2, 1, 128], strides = [1, 1, 1]} : vector<2x8x128xf32> to vector<2x1x128xf32>
    %6 = vector.extract_strided_slice %0 {offsets = [0, 5, 0], sizes = [2, 1, 128], strides = [1, 1, 1]} : vector<2x8x128xf32> to vector<2x1x128xf32>
    %7 = vector.extract_strided_slice %0 {offsets = [0, 6, 0], sizes = [2, 1, 128], strides = [1, 1, 1]} : vector<2x8x128xf32> to vector<2x1x128xf32>
    %c0_2 = arith.constant 0 : index
    %c0_3 = arith.constant 0 : index
    %c0_4 = arith.constant 0 : index
    %8 = vector.load %arg0[%c0_2, %c0_3, %c0_4] : memref<2x4x128xf32, #tpu.memory_space<vmem>>, vector<2x4x128xf32>
    %c0_5 = arith.constant 0 : index
    %c0_6 = arith.constant 0 : index
    %c0_7 = arith.constant 0 : index
    %9 = vector.load %arg1[%c0_5, %c0_6, %c0_7] : memref<2x4x128xf32, #tpu.memory_space<vmem>>, vector<2x4x128xf32>
    %cst = arith.constant 0.000000e+00 : f32
    %10 = vector.broadcast %cst : f32 to vector<2x4x128xf32>
    %11 = arith.maximumf %8, %10 : vector<2x4x128xf32>
    %12 = arith.mulf %8, %9 : vector<2x4x128xf32>
    %13 = arith.subf %11, %12 : vector<2x4x128xf32>
    %14 = math.absf %8 : vector<2x4x128xf32>
    %cst_8 = arith.constant 0.000000e+00 : f32
    %15 = vector.broadcast %cst_8 : f32 to vector<2x4x128xf32>
    %16 = arith.subf %15, %14 : vector<2x4x128xf32>
    %17 = math.exp %16 : vector<2x4x128xf32>
    %cst_9 = arith.constant 1.000000e+00 : f32
    %18 = vector.broadcast %cst_9 : f32 to vector<2x4x128xf32>
    %19 = arith.addf %18, %17 : vector<2x4x128xf32>
    %20 = math.log %19 : vector<2x4x128xf32>
    %21 = arith.addf %13, %20 : vector<2x4x128xf32>
    %22 = vector.broadcast %7 : vector<2x1x128xf32> to vector<2x4x128xf32>
    %23 = arith.mulf %21, %22 : vector<2x4x128xf32>
    %24 = vector.shape_cast %23 : vector<2x4x128xf32> to vector<1x2x4x128xf32>
    %cst_10 = arith.constant dense<0.000000e+00> : vector<1xf32>
    %25 = vector.multi_reduction <add>, %24, %cst_10 [1, 2, 3] : vector<1x2x4x128xf32> to vector<1xf32>
    %26 = vector.shape_cast %25 : vector<1xf32> to vector<1x1x1x1xf32>
    %27 = vector.extract %26[0, 0, 0, 0] : f32 from vector<1x1x1x1xf32>
    %c0_11 = arith.constant 0 : index
    %28 = memref.load %arg6[%c0_11] : memref<3xf32, #tpu.memory_space<smem>>
    memref.store %27, %arg6[%c0_11] : memref<3xf32, #tpu.memory_space<smem>>
    %c0_12 = arith.constant 0 : index
    %c0_13 = arith.constant 0 : index
    %c0_14 = arith.constant 0 : index
    %29 = vector.load %arg3[%c0_12, %c0_13, %c0_14] : memref<2x8x128xf32, #tpu.memory_space<vmem>>, vector<2x8x128xf32>
    %30 = vector.extract_strided_slice %29 {offsets = [0, 0, 0], sizes = [2, 1, 128], strides = [1, 1, 1]} : vector<2x8x128xf32> to vector<2x1x128xf32>
    %31 = vector.extract_strided_slice %29 {offsets = [0, 1, 0], sizes = [2, 1, 128], strides = [1, 1, 1]} : vector<2x8x128xf32> to vector<2x1x128xf32>
    %32 = vector.extract_strided_slice %29 {offsets = [0, 2, 0], sizes = [2, 1, 128], strides = [1, 1, 1]} : vector<2x8x128xf32> to vector<2x1x128xf32>
    %33 = vector.extract_strided_slice %29 {offsets = [0, 3, 0], sizes = [2, 1, 128], strides = [1, 1, 1]} : vector<2x8x128xf32> to vector<2x1x128xf32>
    %c0_15 = arith.constant 0 : index
    %c0_16 = arith.constant 0 : index
    %c0_17 = arith.constant 0 : index
    %34 = vector.load %arg4[%c0_15, %c0_16, %c0_17] : memref<2x4x128xf32, #tpu.memory_space<vmem>>, vector<2x4x128xf32>
    %35 = vector.extract_strided_slice %34 {offsets = [0, 0, 0], sizes = [2, 1, 128], strides = [1, 1, 1]} : vector<2x4x128xf32> to vector<2x1x128xf32>
    %36 = vector.extract_strided_slice %34 {offsets = [0, 1, 0], sizes = [2, 1, 128], strides = [1, 1, 1]} : vector<2x4x128xf32> to vector<2x1x128xf32>
    %37 = vector.extract_strided_slice %34 {offsets = [0, 2, 0], sizes = [2, 1, 128], strides = [1, 1, 1]} : vector<2x4x128xf32> to vector<2x1x128xf32>
    %38 = vector.extract_strided_slice %34 {offsets = [0, 3, 0], sizes = [2, 1, 128], strides = [1, 1, 1]} : vector<2x4x128xf32> to vector<2x1x128xf32>
    %39 = arith.subf %4, %3 : vector<2x1x128xf32>
    %40 = arith.subf %32, %30 : vector<2x1x128xf32>
    %41 = arith.subf %33, %31 : vector<2x1x128xf32>
    %cst_18 = arith.constant 1.000000e-07 : f32
    %42 = vector.broadcast %cst_18 : f32 to vector<2x1x128xf32>
    %43 = arith.addf %41, %42 : vector<2x1x128xf32>
    %44 = arith.subf %37, %35 : vector<2x1x128xf32>
    %45 = arith.subf %38, %36 : vector<2x1x128xf32>
    %cst_19 = arith.constant 1.000000e-07 : f32
    %46 = vector.broadcast %cst_19 : f32 to vector<2x1x128xf32>
    %47 = arith.addf %45, %46 : vector<2x1x128xf32>
    %48 = arith.minimumf %32, %37 : vector<2x1x128xf32>
    %49 = arith.maximumf %30, %35 : vector<2x1x128xf32>
    %50 = arith.subf %48, %49 : vector<2x1x128xf32>
    %cst_20 = arith.constant 0.000000e+00 : f32
    %51 = vector.broadcast %cst_20 : f32 to vector<2x1x128xf32>
    %52 = arith.maximumf %50, %51 : vector<2x1x128xf32>
    %53 = arith.minimumf %33, %38 : vector<2x1x128xf32>
    %54 = arith.maximumf %31, %36 : vector<2x1x128xf32>
    %55 = arith.subf %53, %54 : vector<2x1x128xf32>
    %cst_21 = arith.constant 0.000000e+00 : f32
    %56 = vector.broadcast %cst_21 : f32 to vector<2x1x128xf32>
    %57 = arith.maximumf %55, %56 : vector<2x1x128xf32>
    %58 = arith.mulf %52, %57 : vector<2x1x128xf32>
    %59 = arith.mulf %40, %43 : vector<2x1x128xf32>
    %60 = arith.mulf %44, %47 : vector<2x1x128xf32>
    %61 = arith.addf %59, %60 : vector<2x1x128xf32>
    %62 = arith.subf %61, %58 : vector<2x1x128xf32>
    %cst_22 = arith.constant 1.000000e-07 : f32
    %63 = vector.broadcast %cst_22 : f32 to vector<2x1x128xf32>
    %64 = arith.addf %62, %63 : vector<2x1x128xf32>
    %65 = arith.maximumf %32, %37 : vector<2x1x128xf32>
    %66 = arith.minimumf %30, %35 : vector<2x1x128xf32>
    %67 = arith.subf %65, %66 : vector<2x1x128xf32>
    %68 = arith.maximumf %33, %38 : vector<2x1x128xf32>
    %69 = arith.minimumf %31, %36 : vector<2x1x128xf32>
    %70 = arith.subf %68, %69 : vector<2x1x128xf32>
    %71 = arith.mulf %67, %67 : vector<2x1x128xf32>
    %72 = arith.mulf %70, %70 : vector<2x1x128xf32>
    %73 = arith.addf %71, %72 : vector<2x1x128xf32>
    %cst_23 = arith.constant 1.000000e-07 : f32
    %74 = vector.broadcast %cst_23 : f32 to vector<2x1x128xf32>
    %75 = arith.addf %73, %74 : vector<2x1x128xf32>
    %76 = arith.addf %35, %37 : vector<2x1x128xf32>
    %77 = arith.subf %76, %30 : vector<2x1x128xf32>
    %78 = arith.subf %77, %32 : vector<2x1x128xf32>
    %79 = arith.addf %36, %38 : vector<2x1x128xf32>
    %80 = arith.subf %79, %31 : vector<2x1x128xf32>
    %81 = arith.subf %80, %33 : vector<2x1x128xf32>
    %82 = arith.mulf %78, %78 : vector<2x1x128xf32>
    %83 = arith.mulf %81, %81 : vector<2x1x128xf32>
    %84 = arith.addf %82, %83 : vector<2x1x128xf32>
    %cst_24 = arith.constant 2.500000e-01 : f32
    %85 = vector.broadcast %cst_24 : f32 to vector<2x1x128xf32>
    %86 = arith.mulf %84, %85 : vector<2x1x128xf32>
    %cst_25 = arith.constant 0.405284733 : f32
    %87 = vector.broadcast %cst_25 : f32 to vector<2x1x128xf32>
    %88 = arith.mulf %87, %39 : vector<2x1x128xf32>
    %89 = arith.mulf %88, %39 : vector<2x1x128xf32>
    %90 = tpu.reciprocal %64 {approx = true} : vector<2x1x128xf32> -> vector<2x1x128xf32>
    %91 = arith.mulf %58, %90 : vector<2x1x128xf32>
    %92 = arith.subf %89, %91 : vector<2x1x128xf32>
    %cst_26 = arith.constant 1.00000012 : f32
    %93 = vector.broadcast %cst_26 : f32 to vector<2x1x128xf32>
    %94 = arith.addf %92, %93 : vector<2x1x128xf32>
    %95 = tpu.reciprocal %94 {approx = true} : vector<2x1x128xf32> -> vector<2x1x128xf32>
    %96 = arith.mulf %89, %95 : vector<2x1x128xf32>
    %97 = tpu.reciprocal %75 {approx = true} : vector<2x1x128xf32> -> vector<2x1x128xf32>
    %98 = arith.mulf %86, %97 : vector<2x1x128xf32>
    %99 = arith.mulf %89, %96 : vector<2x1x128xf32>
    %100 = arith.addf %98, %99 : vector<2x1x128xf32>
    %101 = arith.subf %91, %100 : vector<2x1x128xf32>
    %cst_27 = arith.constant 0.000000e+00 : f32
    %102 = vector.broadcast %cst_27 : f32 to vector<2x1x128xf32>
    %103 = arith.cmpf ogt, %2, %102 : vector<2x1x128xf32>
    %cst_28 = arith.constant 1.000000e+00 : f32
    %104 = vector.broadcast %cst_28 : f32 to vector<2x1x128xf32>
    %105 = arith.subf %104, %101 : vector<2x1x128xf32>
    %106 = arith.mulf %105, %1 : vector<2x1x128xf32>
    %cst_29 = arith.constant 0.000000e+00 : f32
    %107 = vector.broadcast %cst_29 : f32 to vector<2x1x128xf32>
    %108 = arith.select %103, %106, %107 : vector<2x1x128xi1>, vector<2x1x128xf32>
    %109 = vector.shape_cast %108 : vector<2x1x128xf32> to vector<1x2x1x128xf32>
    %cst_30 = arith.constant dense<0.000000e+00> : vector<1xf32>
    %110 = vector.multi_reduction <add>, %109, %cst_30 [1, 2, 3] : vector<1x2x1x128xf32> to vector<1xf32>
    %111 = vector.shape_cast %110 : vector<1xf32> to vector<1x1x1x1xf32>
    %112 = vector.extract %111[0, 0, 0, 0] : f32 from vector<1x1x1x1xf32>
    %c1 = arith.constant 1 : index
    %113 = memref.load %arg6[%c1] : memref<3xf32, #tpu.memory_space<smem>>
    memref.store %112, %arg6[%c1] : memref<3xf32, #tpu.memory_space<smem>>
    %c0_31 = arith.constant 0 : index
    %c0_32 = arith.constant 0 : index
    %c0_33 = arith.constant 0 : index
    %c0_34 = arith.constant 0 : index
    %114 = vector.load %arg2[%c0_31, %c0_32, %c0_33, %c0_34] : memref<2x4x8x128xf32, #tpu.memory_space<vmem>>, vector<2x4x8x128xf32>
    %115 = tpu.iota {dimensions = array<i32: 1>} : vector<2x8x128xi32>
    %116 = arith.sitofp %115 : vector<2x8x128xi32> to vector<2x8x128xf32>
    %117 = arith.subf %5, %35 : vector<2x1x128xf32>
    %118 = arith.subf %6, %36 : vector<2x1x128xf32>
    %119 = arith.subf %37, %5 : vector<2x1x128xf32>
    %120 = arith.subf %38, %6 : vector<2x1x128xf32>
    %cst_35 = arith.constant 0.000000e+00 : f32
    %121 = vector.broadcast %cst_35 : f32 to vector<2x1x128xf32>
    %122 = vector.extract_strided_slice %114 {offsets = [0, 0, 0, 0], sizes = [2, 1, 8, 128], strides = [1, 1, 1, 1]} : vector<2x4x8x128xf32> to vector<2x1x8x128xf32>
    %123 = vector.shape_cast %122 : vector<2x1x8x128xf32> to vector<2x8x128xf32>
    %124 = vector.extract_strided_slice %29 {offsets = [0, 4, 0], sizes = [2, 1, 128], strides = [1, 1, 1]} : vector<2x8x128xf32> to vector<2x1x128xf32>
    %cst_36 = arith.constant 0.000000e+00 : f32
    %cst_37 = arith.constant 6.990000e+00 : f32
    %125 = vector.broadcast %cst_36 : f32 to vector<2x1x128xf32>
    %126 = arith.maximumf %125, %117 : vector<2x1x128xf32>
    %127 = vector.broadcast %cst_37 : f32 to vector<2x1x128xf32>
    %128 = arith.minimumf %127, %126 : vector<2x1x128xf32>
    %129 = math.floor %128 : vector<2x1x128xf32>
    %cst_38 = arith.constant 1.000000e+00 : f32
    %130 = vector.broadcast %cst_38 : f32 to vector<2x1x128xf32>
    %131 = arith.addf %129, %130 : vector<2x1x128xf32>
    %132 = arith.subf %131, %128 : vector<2x1x128xf32>
    %cst_39 = arith.constant 1.000000e+00 : f32
    %133 = vector.broadcast %cst_39 : f32 to vector<2x1x128xf32>
    %134 = arith.subf %133, %132 : vector<2x1x128xf32>
    %135 = vector.broadcast %129 : vector<2x1x128xf32> to vector<2x8x128xf32>
    %136 = arith.cmpf oeq, %116, %135 : vector<2x8x128xf32>
    %cst_40 = arith.constant 0.000000e+00 : f32
    %137 = vector.shape_cast %132 : vector<2x1x128xf32> to vector<2x1x128xf32>
    %138 = vector.broadcast %137 : vector<2x1x128xf32> to vector<2x8x128xf32>
    %139 = vector.broadcast %cst_40 : f32 to vector<2x8x128xf32>
    %140 = arith.select %136, %138, %139 : vector<2x8x128xi1>, vector<2x8x128xf32>
    %cst_41 = arith.constant 1.000000e+00 : f32
    %141 = vector.broadcast %cst_41 : f32 to vector<2x1x128xf32>
    %142 = arith.addf %129, %141 : vector<2x1x128xf32>
    %143 = vector.broadcast %142 : vector<2x1x128xf32> to vector<2x8x128xf32>
    %144 = arith.cmpf oeq, %116, %143 : vector<2x8x128xf32>
    %cst_42 = arith.constant 0.000000e+00 : f32
    %145 = vector.shape_cast %134 : vector<2x1x128xf32> to vector<2x1x128xf32>
    %146 = vector.broadcast %145 : vector<2x1x128xf32> to vector<2x8x128xf32>
    %147 = vector.broadcast %cst_42 : f32 to vector<2x8x128xf32>
    %148 = arith.select %144, %146, %147 : vector<2x8x128xi1>, vector<2x8x128xf32>
    %149 = arith.addf %140, %148 : vector<2x8x128xf32>
    %150 = arith.mulf %123, %149 : vector<2x8x128xf32>
    %cst_43 = arith.constant dense<0.000000e+00> : vector<2x128xf32>
    %151 = vector.multi_reduction <add>, %150, %cst_43 [1] : vector<2x8x128xf32> to vector<2x128xf32>
    %152 = vector.shape_cast %151 : vector<2x128xf32> to vector<2x1x128xf32>
    %153 = arith.addf %132, %134 : vector<2x1x128xf32>
    %154 = arith.mulf %153, %124 : vector<2x1x128xf32>
    %155 = arith.subf %154, %152 : vector<2x1x128xf32>
    %156 = arith.addf %121, %155 : vector<2x1x128xf32>
    %157 = vector.extract_strided_slice %114 {offsets = [0, 1, 0, 0], sizes = [2, 1, 8, 128], strides = [1, 1, 1, 1]} : vector<2x4x8x128xf32> to vector<2x1x8x128xf32>
    %158 = vector.shape_cast %157 : vector<2x1x8x128xf32> to vector<2x8x128xf32>
    %159 = vector.extract_strided_slice %29 {offsets = [0, 5, 0], sizes = [2, 1, 128], strides = [1, 1, 1]} : vector<2x8x128xf32> to vector<2x1x128xf32>
    %cst_44 = arith.constant 0.000000e+00 : f32
    %cst_45 = arith.constant 6.990000e+00 : f32
    %160 = vector.broadcast %cst_44 : f32 to vector<2x1x128xf32>
    %161 = arith.maximumf %160, %118 : vector<2x1x128xf32>
    %162 = vector.broadcast %cst_45 : f32 to vector<2x1x128xf32>
    %163 = arith.minimumf %162, %161 : vector<2x1x128xf32>
    %164 = math.floor %163 : vector<2x1x128xf32>
    %cst_46 = arith.constant 1.000000e+00 : f32
    %165 = vector.broadcast %cst_46 : f32 to vector<2x1x128xf32>
    %166 = arith.addf %164, %165 : vector<2x1x128xf32>
    %167 = arith.subf %166, %163 : vector<2x1x128xf32>
    %cst_47 = arith.constant 1.000000e+00 : f32
    %168 = vector.broadcast %cst_47 : f32 to vector<2x1x128xf32>
    %169 = arith.subf %168, %167 : vector<2x1x128xf32>
    %170 = vector.broadcast %164 : vector<2x1x128xf32> to vector<2x8x128xf32>
    %171 = arith.cmpf oeq, %116, %170 : vector<2x8x128xf32>
    %cst_48 = arith.constant 0.000000e+00 : f32
    %172 = vector.shape_cast %167 : vector<2x1x128xf32> to vector<2x1x128xf32>
    %173 = vector.broadcast %172 : vector<2x1x128xf32> to vector<2x8x128xf32>
    %174 = vector.broadcast %cst_48 : f32 to vector<2x8x128xf32>
    %175 = arith.select %171, %173, %174 : vector<2x8x128xi1>, vector<2x8x128xf32>
    %cst_49 = arith.constant 1.000000e+00 : f32
    %176 = vector.broadcast %cst_49 : f32 to vector<2x1x128xf32>
    %177 = arith.addf %164, %176 : vector<2x1x128xf32>
    %178 = vector.broadcast %177 : vector<2x1x128xf32> to vector<2x8x128xf32>
    %179 = arith.cmpf oeq, %116, %178 : vector<2x8x128xf32>
    %cst_50 = arith.constant 0.000000e+00 : f32
    %180 = vector.shape_cast %169 : vector<2x1x128xf32> to vector<2x1x128xf32>
    %181 = vector.broadcast %180 : vector<2x1x128xf32> to vector<2x8x128xf32>
    %182 = vector.broadcast %cst_50 : f32 to vector<2x8x128xf32>
    %183 = arith.select %179, %181, %182 : vector<2x8x128xi1>, vector<2x8x128xf32>
    %184 = arith.addf %175, %183 : vector<2x8x128xf32>
    %185 = arith.mulf %158, %184 : vector<2x8x128xf32>
    %cst_51 = arith.constant dense<0.000000e+00> : vector<2x128xf32>
    %186 = vector.multi_reduction <add>, %185, %cst_51 [1] : vector<2x8x128xf32> to vector<2x128xf32>
    %187 = vector.shape_cast %186 : vector<2x128xf32> to vector<2x1x128xf32>
    %188 = arith.addf %167, %169 : vector<2x1x128xf32>
    %189 = arith.mulf %188, %159 : vector<2x1x128xf32>
    %190 = arith.subf %189, %187 : vector<2x1x128xf32>
    %191 = arith.addf %156, %190 : vector<2x1x128xf32>
    %192 = vector.extract_strided_slice %114 {offsets = [0, 2, 0, 0], sizes = [2, 1, 8, 128], strides = [1, 1, 1, 1]} : vector<2x4x8x128xf32> to vector<2x1x8x128xf32>
    %193 = vector.shape_cast %192 : vector<2x1x8x128xf32> to vector<2x8x128xf32>
    %194 = vector.extract_strided_slice %29 {offsets = [0, 6, 0], sizes = [2, 1, 128], strides = [1, 1, 1]} : vector<2x8x128xf32> to vector<2x1x128xf32>
    %cst_52 = arith.constant 0.000000e+00 : f32
    %cst_53 = arith.constant 6.990000e+00 : f32
    %195 = vector.broadcast %cst_52 : f32 to vector<2x1x128xf32>
    %196 = arith.maximumf %195, %119 : vector<2x1x128xf32>
    %197 = vector.broadcast %cst_53 : f32 to vector<2x1x128xf32>
    %198 = arith.minimumf %197, %196 : vector<2x1x128xf32>
    %199 = math.floor %198 : vector<2x1x128xf32>
    %cst_54 = arith.constant 1.000000e+00 : f32
    %200 = vector.broadcast %cst_54 : f32 to vector<2x1x128xf32>
    %201 = arith.addf %199, %200 : vector<2x1x128xf32>
    %202 = arith.subf %201, %198 : vector<2x1x128xf32>
    %cst_55 = arith.constant 1.000000e+00 : f32
    %203 = vector.broadcast %cst_55 : f32 to vector<2x1x128xf32>
    %204 = arith.subf %203, %202 : vector<2x1x128xf32>
    %205 = vector.broadcast %199 : vector<2x1x128xf32> to vector<2x8x128xf32>
    %206 = arith.cmpf oeq, %116, %205 : vector<2x8x128xf32>
    %cst_56 = arith.constant 0.000000e+00 : f32
    %207 = vector.shape_cast %202 : vector<2x1x128xf32> to vector<2x1x128xf32>
    %208 = vector.broadcast %207 : vector<2x1x128xf32> to vector<2x8x128xf32>
    %209 = vector.broadcast %cst_56 : f32 to vector<2x8x128xf32>
    %210 = arith.select %206, %208, %209 : vector<2x8x128xi1>, vector<2x8x128xf32>
    %cst_57 = arith.constant 1.000000e+00 : f32
    %211 = vector.broadcast %cst_57 : f32 to vector<2x1x128xf32>
    %212 = arith.addf %199, %211 : vector<2x1x128xf32>
    %213 = vector.broadcast %212 : vector<2x1x128xf32> to vector<2x8x128xf32>
    %214 = arith.cmpf oeq, %116, %213 : vector<2x8x128xf32>
    %cst_58 = arith.constant 0.000000e+00 : f32
    %215 = vector.shape_cast %204 : vector<2x1x128xf32> to vector<2x1x128xf32>
    %216 = vector.broadcast %215 : vector<2x1x128xf32> to vector<2x8x128xf32>
    %217 = vector.broadcast %cst_58 : f32 to vector<2x8x128xf32>
    %218 = arith.select %214, %216, %217 : vector<2x8x128xi1>, vector<2x8x128xf32>
    %219 = arith.addf %210, %218 : vector<2x8x128xf32>
    %220 = arith.mulf %193, %219 : vector<2x8x128xf32>
    %cst_59 = arith.constant dense<0.000000e+00> : vector<2x128xf32>
    %221 = vector.multi_reduction <add>, %220, %cst_59 [1] : vector<2x8x128xf32> to vector<2x128xf32>
    %222 = vector.shape_cast %221 : vector<2x128xf32> to vector<2x1x128xf32>
    %223 = arith.addf %202, %204 : vector<2x1x128xf32>
    %224 = arith.mulf %223, %194 : vector<2x1x128xf32>
    %225 = arith.subf %224, %222 : vector<2x1x128xf32>
    %226 = arith.addf %191, %225 : vector<2x1x128xf32>
    %227 = vector.extract_strided_slice %114 {offsets = [0, 3, 0, 0], sizes = [2, 1, 8, 128], strides = [1, 1, 1, 1]} : vector<2x4x8x128xf32> to vector<2x1x8x128xf32>
    %228 = vector.shape_cast %227 : vector<2x1x8x128xf32> to vector<2x8x128xf32>
    %229 = vector.extract_strided_slice %29 {offsets = [0, 7, 0], sizes = [2, 1, 128], strides = [1, 1, 1]} : vector<2x8x128xf32> to vector<2x1x128xf32>
    %cst_60 = arith.constant 0.000000e+00 : f32
    %cst_61 = arith.constant 6.990000e+00 : f32
    %230 = vector.broadcast %cst_60 : f32 to vector<2x1x128xf32>
    %231 = arith.maximumf %230, %120 : vector<2x1x128xf32>
    %232 = vector.broadcast %cst_61 : f32 to vector<2x1x128xf32>
    %233 = arith.minimumf %232, %231 : vector<2x1x128xf32>
    %234 = math.floor %233 : vector<2x1x128xf32>
    %cst_62 = arith.constant 1.000000e+00 : f32
    %235 = vector.broadcast %cst_62 : f32 to vector<2x1x128xf32>
    %236 = arith.addf %234, %235 : vector<2x1x128xf32>
    %237 = arith.subf %236, %233 : vector<2x1x128xf32>
    %cst_63 = arith.constant 1.000000e+00 : f32
    %238 = vector.broadcast %cst_63 : f32 to vector<2x1x128xf32>
    %239 = arith.subf %238, %237 : vector<2x1x128xf32>
    %240 = vector.broadcast %234 : vector<2x1x128xf32> to vector<2x8x128xf32>
    %241 = arith.cmpf oeq, %116, %240 : vector<2x8x128xf32>
    %cst_64 = arith.constant 0.000000e+00 : f32
    %242 = vector.shape_cast %237 : vector<2x1x128xf32> to vector<2x1x128xf32>
    %243 = vector.broadcast %242 : vector<2x1x128xf32> to vector<2x8x128xf32>
    %244 = vector.broadcast %cst_64 : f32 to vector<2x8x128xf32>
    %245 = arith.select %241, %243, %244 : vector<2x8x128xi1>, vector<2x8x128xf32>
    %cst_65 = arith.constant 1.000000e+00 : f32
    %246 = vector.broadcast %cst_65 : f32 to vector<2x1x128xf32>
    %247 = arith.addf %234, %246 : vector<2x1x128xf32>
    %248 = vector.broadcast %247 : vector<2x1x128xf32> to vector<2x8x128xf32>
    %249 = arith.cmpf oeq, %116, %248 : vector<2x8x128xf32>
    %cst_66 = arith.constant 0.000000e+00 : f32
    %250 = vector.shape_cast %239 : vector<2x1x128xf32> to vector<2x1x128xf32>
    %251 = vector.broadcast %250 : vector<2x1x128xf32> to vector<2x8x128xf32>
    %252 = vector.broadcast %cst_66 : f32 to vector<2x8x128xf32>
    %253 = arith.select %249, %251, %252 : vector<2x8x128xi1>, vector<2x8x128xf32>
    %254 = arith.addf %245, %253 : vector<2x8x128xf32>
    %255 = arith.mulf %228, %254 : vector<2x8x128xf32>
    %cst_67 = arith.constant dense<0.000000e+00> : vector<2x128xf32>
    %256 = vector.multi_reduction <add>, %255, %cst_67 [1] : vector<2x8x128xf32> to vector<2x128xf32>
    %257 = vector.shape_cast %256 : vector<2x128xf32> to vector<2x1x128xf32>
    %258 = arith.addf %237, %239 : vector<2x1x128xf32>
    %259 = arith.mulf %258, %229 : vector<2x1x128xf32>
    %260 = arith.subf %259, %257 : vector<2x1x128xf32>
    %261 = arith.addf %226, %260 : vector<2x1x128xf32>
    %cst_68 = arith.constant 2.500000e-01 : f32
    %262 = vector.broadcast %cst_68 : f32 to vector<2x1x128xf32>
    %263 = arith.mulf %261, %262 : vector<2x1x128xf32>
    %cst_69 = arith.constant 0.000000e+00 : f32
    %264 = vector.broadcast %cst_69 : f32 to vector<2x1x128xf32>
    %265 = arith.cmpf ogt, %2, %264 : vector<2x1x128xf32>
    %266 = arith.mulf %263, %1 : vector<2x1x128xf32>
    %cst_70 = arith.constant 0.000000e+00 : f32
    %267 = vector.broadcast %cst_70 : f32 to vector<2x1x128xf32>
    %268 = arith.select %265, %266, %267 : vector<2x1x128xi1>, vector<2x1x128xf32>
    %269 = vector.shape_cast %268 : vector<2x1x128xf32> to vector<1x2x1x128xf32>
    %cst_71 = arith.constant dense<0.000000e+00> : vector<1xf32>
    %270 = vector.multi_reduction <add>, %269, %cst_71 [1, 2, 3] : vector<1x2x1x128xf32> to vector<1xf32>
    %271 = vector.shape_cast %270 : vector<1xf32> to vector<1x1x1x1xf32>
    %272 = vector.extract %271[0, 0, 0, 0] : f32 from vector<1x1x1x1xf32>
    %c2 = arith.constant 2 : index
    %273 = memref.load %arg6[%c2] : memref<3xf32, #tpu.memory_space<smem>>
    memref.store %272, %arg6[%c2] : memref<3xf32, #tpu.memory_space<smem>>
    return
  }
}

</mosaic_0001>

<bundles_post_ra>
// kernel: _loss_core.3
= control target key start
LH: loop header
LB: loop body
LE: loop exit
PB: predicated region body
PF: predicated region fallthrough
CT: control target
= control target key end

     0   :  { %v20_v55 = vlaneseq  ;;  %vm251_vm0 = vcmask 1040384   ;;  %vm254_vm1 = vcmask 1041408   ;;  %vm257_vm2 = vcmask 1042432   ;;  %s446_s0 = inlined_call_operand.vmem [shape: f32[2,4,8,128], index: 0, kind: input, shape index: {}]   ;;  %s447_s1 = inlined_call_operand.vmem [shape: f32[8,128], index: 1, kind: input, shape index: {}]   ;;  %s448_s2 = inlined_call_operand.vmem [shape: f32[2,8,128], index: 2, kind: output, shape index: {}]  }
   0x1   :  { %v11_v0 = vld [vmem:[%s446_s0] sm:$0xff]  ;;  %v12_v1 = vld [vmem:[%s446_s0 + $0x8] sm:$0xff]  ;;  %v350_v2 = vld [vmem:[%s446_s0 + $0x10] sm:$0xff]  ;;  %vm260_vm3 = vcmask 1043456   ;;  %vm263_vm4 = vcmask 1044480   ;;  %vm266_vm5 = vcmask 1045504  }
   0x2   :  { %v355_v3 = vld [vmem:[%s446_s0 + $0x18] sm:$0xff]  ;;  %v15_v4 = vld [vmem:[%s446_s0 + $0x20] sm:$0xff]  ;;  %v16_v5 = vld [vmem:[%s446_s0 + $0x28] sm:$0xff]  ;;  %v23_v6 = vrot.slane %v11_v0, 4  ;;  %v81_v7 = vrot.slane %v12_v1, 4  ;;  %v139_v12 = vrot.slane %v350_v2, 4 }
   0x3   :  { %v366_v8 = vld [vmem:[%s446_s0 + $0x30] sm:$0xff]  ;;  %v371_v9 = vld [vmem:[%s446_s0 + $0x38] sm:$0xff]  ;;  %v29_v10 = vrot.slane %v15_v4, 4  ;;  %v87_v11 = vrot.slane %v16_v5, 4  ;;  %v195_v19 = vrot.slane %v355_v3, 4  ;;  %vm269_vm6 = vcmask 1046528  }
   0x4   :  { %v24_v13 = vmax.f32 %v11_v0, %v23_v6  ;;  %v82_v14 = vmax.f32 %v12_v1, %v81_v7  ;;  %v145_v15 = vrot.slane %v366_v8, 4  ;;  %v140_v18 = vmax.f32 %v350_v2, %v139_v12 }
   0x5   :  { %v30_v16 = vmax.f32 %v15_v4, %v29_v10  ;;  %v88_v17 = vmax.f32 %v16_v5, %v87_v11  ;;  %v201_v23 = vrot.slane %v371_v9, 4  ;;  %v196_v27 = vmax.f32 %v355_v3, %v195_v19 }
   0x6   :  { %v25_v20 = vrot.slane %v24_v13, 2  ;;  %v83_v21 = vrot.slane %v82_v14, 2  ;;  %v146_v22 = vmax.f32 %v366_v8, %v145_v15  ;;  %v141_v26 = vrot.slane %v140_v18, 2 }
   0x7   :  { %v31_v24 = vrot.slane %v30_v16, 2  ;;  %v89_v25 = vrot.slane %v88_v17, 2  ;;  %v202_v31 = vmax.f32 %v371_v9, %v201_v23  ;;  %v197_v35 = vrot.slane %v196_v27, 2 }
   0x8   :  { %v26_v28 = vmax.f32 %v24_v13, %v25_v20  ;;  %v84_v29 = vmax.f32 %v82_v14, %v83_v21  ;;  %v147_v30 = vrot.slane %v146_v22, 2  ;;  %v142_v34 = vmax.f32 %v140_v18, %v141_v26 }
   0x9   :  { %v32_v32 = vmax.f32 %v30_v16, %v31_v24  ;;  %v90_v33 = vmax.f32 %v88_v17, %v89_v25  ;;  %v203_v39 = vrot.slane %v202_v31, 2  ;;  %v198_v42 = vmax.f32 %v196_v27, %v197_v35 }
   0xa   :  { %v27_v36 = vrot.slane %v26_v28, 1  ;;  %v85_v37 = vrot.slane %v84_v29, 1  ;;  %v148_v38 = vmax.f32 %v146_v22, %v147_v30  ;;  %v143_v45 = vrot.slane %v142_v34, 1 }
   0xb   :  { %v33_v40 = vrot.slane %v32_v32, 1  ;;  %v91_v41 = vrot.slane %v90_v33, 1  ;;  %v204_v49 = vmax.f32 %v202_v31, %v203_v39  ;;  %v199_v52 = vrot.slane %v198_v42, 1 }
   0xc   :  { %v381_v43 = vmax.f32 %v26_v28, %v27_v36  ;;  %v383_v44 = vmax.f32 %v84_v29, %v85_v37  ;;  %v149_v48 = vrot.slane %v148_v38, 1  ;;  %v393_v58 = vmax.f32 %v142_v34, %v143_v45 }
   0xd   :  { %v385_v46 = vmax.f32 %v32_v32, %v33_v40  ;;  %v387_v47 = vmax.f32 %v90_v33, %v91_v41  ;;  %v205_v62 = vrot.slane %v204_v49, 1  ;;  %v397_v63 = vmax.f32 %v198_v42, %v199_v52 }
   0xe   :  { %v35_v50 = vsub.f32 %v11_v0, %v381_v43  ;;  %v93_v51 = vsub.f32 %v12_v1, %v383_v44  ;;  %v395_v61 = vmax.f32 %v148_v38, %v149_v48  ;;  %v151_v0 = vsub.f32 %v350_v2, %v393_v58 }
   0xf   :  { %v36_v53 = vsub.f32 %v15_v4, %v385_v46  ;;  %v94_v54 = vsub.f32 %v16_v5, %v387_v47  ;;  %v21_v1 = vshrl.u32 %v20_v55, 7  ;;  %v403_v5 = vmax.f32 %v204_v49, %v205_v62 }
  0x10   :  { %v37_v56 = vmul.f32 1.442695, %v35_v50  ;;  %v95_v57 = vmul.f32 1.442695, %v93_v51  ;;  %v152_v4 = vsub.f32 %v366_v8, %v395_v61  ;;  %v207_v6 = vsub.f32 %v355_v3, %v397_v63 }
  0x11   :  { %v39_v59 = vmul.f32 1.442695, %v36_v53  ;;  %v97_v60 = vmul.f32 1.442695, %v94_v54  ;;  %v153_v7 = vmul.f32 1.442695, %v151_v0  ;;  %v407_v10 = vcvt.s32.f32 %v21_v1 }
  0x12   :  { %278 = vpow2.f32 %v37_v56  ;;  %v155_v11 = vmul.f32 1.442695, %v152_v4  ;;  %v208_v12 = vsub.f32 %v371_v9, %v403_v5  ;;  %v209_v13 = vmul.f32 1.442695, %v207_v6 }
  0x13   :  { %280 = vpow2.f32 %v39_v59 }
  0x14   :  { %282 = vpow2.f32 %v95_v57  ;;  %v211_v8 = vmul.f32 1.442695, %v208_v12 }
  0x15   :  { %284 = vpow2.f32 %v97_v60 }
  0x16   :  { %286 = vpow2.f32 %v153_v7 }
  0x17   :  { %288 = vpow2.f32 %v155_v11 }
  0x18   :  { %290 = vpow2.f32 %v209_v13 }
  0x19   :  { %292 = vpow2.f32 %v211_v8 }
  0x1c   :  { %v279_v14 = vpop.eup %278 }
  0x1d   :  { %v281_v2 = vpop.eup %280  ;;  %v41_v15 = vrot.slane %v279_v14, 4  ;;  %v53_v16 = vmul.f32 %v279_v14, %v407_v10 }
  0x1e   :  { %v283_v17 = vpop.eup %282  ;;  %v47_v18 = vrot.slane %v281_v2, 4  ;;  %v54_v3 = vmul.f32 %v281_v2, %v407_v10 }
  0x1f   :  { %v285_v19 = vpop.eup %284  ;;  %v42_v20 = vadd.f32 %v279_v14, %v41_v15  ;;  %v55_v21 = vrot.slane %v53_v16, 4  ;;  %v99_v22 = vrot.slane %v283_v17, 4  ;;  %v111_v9 = vmul.f32 %v283_v17, %v407_v10 }
  0x20   :  { %v48_v23 = vadd.f32 %v281_v2, %v47_v18  ;;  %v61_v24 = vrot.slane %v54_v3, 4  ;;  %v105_v25 = vrot.slane %v285_v19, 4  ;;  %v112_v26 = vmul.f32 %v285_v19, %v407_v10  ;;  %v287_v42 = vpop.eup %286 }
  0x21   :  { %v43_v27 = vrot.slane %v42_v20, 2  ;;  %v100_v28 = vadd.f32 %v283_v17, %v99_v22  ;;  %v113_v29 = vrot.slane %v111_v9, 4  ;;  %v56_v31 = vadd.f32 %v55_v21, %v53_v16  ;;  %v289_v51 = vpop.eup %288 }
  0x22   :  { %v49_v30 = vrot.slane %v48_v23, 2  ;;  %v62_v32 = vadd.f32 %v61_v24, %v54_v3  ;;  %v106_v33 = vadd.f32 %v285_v19, %v105_v25  ;;  %v119_v36 = vrot.slane %v112_v26, 4  ;;  %v291_v54 = vpop.eup %290 }
  0x23   :  { %v44_v34 = vadd.f32 %v43_v27, %v42_v20  ;;  %v101_v35 = vrot.slane %v100_v28, 2  ;;  %v114_v39 = vadd.f32 %v113_v29, %v111_v9  ;;  %v57_v48 = vrot.slane %v56_v31, 2  ;;  %v293_v1 = vpop.eup %292 }
  0x24   :  { %v50_v37 = vadd.f32 %v49_v30, %v48_v23  ;;  %v107_v38 = vrot.slane %v106_v33, 2  ;;  %v63_v49 = vrot.slane %v62_v32, 2  ;;  %v120_v53 = vadd.f32 %v119_v36, %v112_v26 }
  0x25   :  { %v45_v40 = vrot.slane %v44_v34, 1  ;;  %v102_v41 = vadd.f32 %v101_v35, %v100_v28  ;;  %v115_v57 = vrot.slane %v114_v39, 2  ;;  %v58_v60 = vadd.f32 %v57_v48, %v56_v31 }
  0x26   :  { %v51_v45 = vrot.slane %v50_v37, 1  ;;  %v108_v50 = vadd.f32 %v107_v38, %v106_v33  ;;  %v64_v62 = vadd.f32 %v63_v49, %v62_v32  ;;  %v121_v6 = vrot.slane %v120_v53, 2 }
  0x27   :  { %v103_v52 = vrot.slane %v102_v41, 1  ;;  %v46_v55 = vadd.f32 %v45_v40, %v44_v34  ;;  %v157_v7 = vrot.slane %v287_v42, 4  ;;  %v163_v11 = vrot.slane %v289_v51, 4 }
  0x28   :  { %v109_v56 = vrot.slane %v108_v50, 1  ;;  %v52_v59 = vadd.f32 %v51_v45, %v50_v37  ;;  %v116_v12 = vadd.f32 %v115_v57, %v114_v39  ;;  %v169_v13 = vmul.f32 %v287_v42, %v407_v10 }
  0x29   :  { %v104_v0 = vadd.f32 %v103_v52, %v102_v41  ;;  %294 = vrcp.f32 %v46_v55  ;;  %v170_v14 = vmul.f32 %v289_v51, %v407_v10  ;;  %v158_v2 = vadd.f32 %v287_v42, %v157_v7 }
  0x2a   :  { %v110_v4 = vadd.f32 %v109_v56, %v108_v50  ;;  %296 = vrcp.f32 %v52_v59  ;;  %v164_v15 = vadd.f32 %v289_v51, %v163_v11  ;;  %v213_v16 = vrot.slane %v291_v54, 4 }
  0x2b   :  { %298 = vrcp.f32 %v104_v0  ;;  %v171_v8 = vrot.slane %v169_v13, 4  ;;  %v177_v17 = vrot.slane %v170_v14, 4  ;;  %v219_v18 = vrot.slane %v293_v1, 4 }
  0x2c   :  { %300 = vrcp.f32 %v110_v4  ;;  %v159_v3 = vrot.slane %v158_v2, 2  ;;  %v165_v19 = vrot.slane %v164_v15, 2  ;;  %v214_v20 = vadd.f32 %v291_v54, %v213_v16 }
  0x2d   :  { %v59_v21 = vrot.slane %v58_v60, 1  ;;  %v122_v22 = vadd.f32 %v121_v6, %v120_v53  ;;  %v172_v9 = vadd.f32 %v171_v8, %v169_v13  ;;  %v220_v23 = vadd.f32 %v293_v1, %v219_v18 }
  0x2e   :  { %v160_v24 = vadd.f32 %v159_v3, %v158_v2  ;;  %v166_v25 = vadd.f32 %v165_v19, %v164_v15  ;;  %v178_v26 = vadd.f32 %v177_v17, %v170_v14  ;;  %v215_v27 = vrot.slane %v214_v20, 2  ;;  %v19_v3 = vld [vmem:[%s447_s1] sm:$0xff] }
  0x2f   :  { %v117_v28 = vrot.slane %v116_v12, 1  ;;  %v173_v29 = vrot.slane %v172_v9, 2  ;;  %v221_v30 = vrot.slane %v220_v23, 2  ;;  %v225_v34 = vmul.f32 %v291_v54, %v407_v10 }
  0x30   :  { %v161_v31 = vrot.slane %v160_v24, 1  ;;  %v167_v32 = vrot.slane %v166_v25, 1  ;;  %v216_v33 = vadd.f32 %v215_v27, %v214_v20  ;;  %v65_v35 = vrot.slane %v64_v62, 1 }
  0x31   :  { %302 = vlog2.f32 %v46_v55  ;;  %v123_v36 = vrot.slane %v122_v22, 1  ;;  %v60_v37 = vadd.f32 %v59_v21, %v58_v60  ;;  %v179_v39 = vrot.slane %v178_v26, 2 }
  0x32   :  { %304 = vlog2.f32 %v52_v59  ;;  %v162_v38 = vadd.f32 %v161_v31, %v160_v24  ;;  %v168_v41 = vadd.f32 %v167_v32, %v166_v25  ;;  %v174_v42 = vadd.f32 %v173_v29, %v172_v9 }
  0x33   :  { %v295_v40 = vpop.eup %294  ;;  %v217_v45 = vrot.slane %v216_v33, 1  ;;  %v222_v48 = vadd.f32 %v221_v30, %v220_v23  ;;  %v118_v50 = vadd.f32 %v117_v28, %v116_v12  ;;  %v227_v51 = vrot.slane %v225_v34, 4 }
  0x34   :  { %v297_v49 = vpop.eup %296  ;;  %306 = vrcp.f32 %v162_v38  ;;  %v66_v53 = vadd.f32 %v65_v35, %v64_v62  ;;  %v124_v56 = vadd.f32 %v123_v36, %v122_v22  ;;  %v68_v55 = vmul.f32 %v295_v40, %v60_v37 }
  0x35   :  { %v299_v52 = vpop.eup %298  ;;  %308 = vlog2.f32 %v104_v0  ;;  %v180_v57 = vadd.f32 %v179_v39, %v178_v26  ;;  %v226_v59 = vmul.f32 %v293_v1, %v407_v10  ;;  %v175_v60 = vrot.slane %v174_v42, 1 }
  0x36   :  { %v301_v54 = vpop.eup %300  ;;  %310 = vlog2.f32 %v110_v4  ;;  %v218_v6 = vadd.f32 %v217_v45, %v216_v33  ;;  %v223_v7 = vrot.slane %v222_v48, 1  ;;  %v126_v11 = vmul.f32 %v299_v52, %v118_v50 }
  0x37   :  { %312 = vrcp.f32 %v168_v41  ;;  %v228_v13 = vadd.f32 %v227_v51, %v225_v34  ;;  %v70_v12 = vmul.f32 %v297_v49, %v66_v53  ;;  %v128_v14 = vmul.f32 %v301_v54, %v124_v56 }
  0x38   :  { %314 = vlog2.f32 %v162_v38  ;;  %v224_v2 = vadd.f32 %v223_v7, %v222_v48  ;;  %v181_v62 = vrot.slane %v180_v57, 1  ;;  %v233_v0 = vrot.slane %v226_v59, 4 }
  0x39   :  { %316 = vlog2.f32 %v168_v41  ;;  %v229_v15 = vrot.slane %v228_v13, 2  ;;  %v71_v8 = vmul.f32 -1.0, %v68_v55  ;;  %v176_v4 = vadd.f32 %v175_v60, %v174_v42 }
  0x3a   :  { %318 = vrcp.f32 %v218_v6  ;;  %v129_v10 = vmul.f32 -1.0, %v126_v11  ;;  %v234_v18 = vadd.f32 %v233_v0, %v226_v59  ;;  %v72_v19 = vmul.f32 -1.0, %v70_v12 }
  0x3b   :  { %v303_v16 = vpop.eup %302  ;;  %v230_v1 = vadd.f32 %v229_v15, %v228_v13  ;;  %320 = vrcp.f32 %v224_v2  ;;  %v130_v20 = vmul.f32 -1.0, %v128_v14  ;;  %v182_v22 = vadd.f32 %v181_v62, %v180_v57 }
  0x3c   :  { %v305_v17 = vpop.eup %304  ;;  %322 = vlog2.f32 %v218_v6  ;;  %v235_v23 = vrot.slane %v234_v18, 2  ;;  %v73_v27 = vadd.f32 %v71_v8, %v19_v3  ;;  %v131_v28 = vadd.f32 %v129_v10, %v19_v3 }
  0x3d   :  { %v231_v9 = vrot.slane %v230_v1, 1  ;;  %324 = vlog2.f32 %v224_v2  ;;  %v74_v31 = vadd.f32 %v72_v19, %v19_v3  ;;  %v132_v32 = vadd.f32 %v130_v20, %v19_v3 }
  0x3e   :  { %v307_v21 = vpop.eup %306  ;;  %v236_v29 = vadd.f32 %v235_v23, %v234_v18  ;;  %v76_v38 = vmul.f32 0.6931472, %v303_v16  ;;  %v78_v39 = vmul.f32 0.6931472, %v305_v17  ;;  %v252_v48 = vsel %vm251_vm0, %v73_v27, %v131_v28 }
  0x3f   :  { %v309_v24 = vpop.eup %308  ;;  %v184_v25 = vmul.f32 %v307_v21, %v176_v4  ;;  %v232_v35 = vadd.f32 %v231_v9, %v230_v1  ;;  %v253_v52 = vsel %vm251_vm0, %v74_v31, %v132_v32 }
  0x40   :  { %v311_v26 = vpop.eup %310  ;;  %v237_v36 = vrot.slane %v236_v29, 1  ;;  %v134_v41 = vmul.f32 0.6931472, %v309_v24  ;;  %v79_v57 = vadd.f32 %v76_v38, %v381_v43  ;;  %v80_v59 = vadd.f32 %v78_v39, %v385_v46 }
  0x41   :  { %v313_v30 = vpop.eup %312  ;;  %v187_v40 = vadd.f32 %v184_v25, %v19_v3  ;;  %v136_v50 = vmul.f32 0.6931472, %v311_v26 }
  0x42   :  { %v315_v33 = vpop.eup %314  ;;  %v186_v34 = vmul.f32 %v313_v30, %v182_v22  ;;  %v238_v45 = vadd.f32 %v237_v36, %v236_v29  ;;  %v137_v11 = vadd.f32 %v134_v41, %v383_v44 }
  0x43   :  { %v317_v37 = vpop.eup %316  ;;  %v190_v51 = vmul.f32 0.6931472, %v315_v33  ;;  %v255_v6 = vsel %vm254_vm1, %v252_v48, %v187_v40  ;;  %v138_v2 = vadd.f32 %v136_v50, %v387_v47 }
  0x44   :  { %v188_v42 = vadd.f32 %v186_v34, %v19_v3  ;;  %v319_v49 = vpop.eup %318  ;;  %v192_v56 = vmul.f32 0.6931472, %v317_v37 }
  0x45   :  { %v321_v53 = vpop.eup %320  ;;  %v240_v54 = vmul.f32 %v319_v49, %v232_v35  ;;  %v193_v62 = vadd.f32 %v190_v51, %v393_v58 }
  0x46   :  { %v323_v55 = vpop.eup %322  ;;  %v242_v60 = vmul.f32 %v321_v53, %v238_v45  ;;  %v256_v14 = vsel %vm254_vm1, %v253_v52, %v188_v42  ;;  %v194_v43 = vadd.f32 %v192_v56, %v395_v61 }
  0x47   :  { %v325_v7 = vpop.eup %324  ;;  %v243_v13 = vadd.f32 %v240_v54, %v19_v3  ;;  %v246_v12 = vmul.f32 0.6931472, %v323_v55 }
  0x48   :  { %v244_v15 = vadd.f32 %v242_v60, %v19_v3  ;;  %v248_v0 = vmul.f32 0.6931472, %v325_v7 }
  0x49   :  { %v249_v46 = vadd.f32 %v246_v12, %v397_v63  ;;  %v258_v16 = vsel %vm257_vm2, %v255_v6, %v243_v13 }
  0x4a   :  { %v250_v8 = vadd.f32 %v248_v0, %v403_v5  ;;  %v259_v44 = vsel %vm257_vm2, %v256_v14, %v244_v15  ;;  %v261_v4 = vsel %vm260_vm3, %v258_v16, %v79_v57 }
  0x4b   :  { %v262_v47 = vsel %vm260_vm3, %v259_v44, %v80_v59  ;;  %v264_v58 = vsel %vm263_vm4, %v261_v4, %v137_v11 }
  0x4c   :  { %v265_v17 = vsel %vm263_vm4, %v262_v47, %v138_v2  ;;  %v267_v10 = vsel %vm266_vm5, %v264_v58, %v193_v62 }
  0x4d   :  { %v268_v61 = vsel %vm266_vm5, %v265_v17, %v194_v43  ;;  %v270_v1 = vsel %vm269_vm6, %v267_v10, %v249_v46 }
  0x4e   :  { %v271_v63 = vsel %vm269_vm6, %v268_v61, %v250_v8  ;;  %272 = vst [vmem:[%s448_s2] sm:$0xff] %v270_v1 }
  0x4f   :  { %273 = vst [vmem:[%s448_s2 + $0x8] sm:$0xff] %v271_v63 }

// kernel: _loss_core.4
= control target key start
LH: loop header
LB: loop body
LE: loop exit
PB: predicated region body
PF: predicated region fallthrough
CT: control target
= control target key end

     0   :  { %v350_v1 = vmov 2   ;;  %s351_s20 = smov 2   ;;  %v352_v3 = vmov 0   ;;  %v353_v4 = vmov 1   ;;  %s354_s23 = smov 127   ;;  %v355_v11 = vmov 3   ;;  %s508_s0 = inlined_call_operand.vmem [shape: f32[2,3,8], index: 0, kind: input, shape index: {}]   ;;  %s509_s1 = inlined_call_operand.vmem [shape: f32[2,8,128], index: 1, kind: input, shape index: {}]   ;;  %s510_s3 = inlined_call_operand.vmem [shape: f32[2,3,128], index: 3, kind: input, shape index: {}]   ;;  %s511_s2 = inlined_call_operand.vmem [shape: f32[2,3,128], index: 2, kind: input, shape index: {}]   ;;  %s512_s4 = inlined_call_operand.vmem [shape: f32[2,3,128], index: 4, kind: output, shape index: {0}]   ;;  %s513_s5 = inlined_call_operand.vmem [shape: f32[2,3,128], index: 5, kind: output, shape index: {1}]  }
   0x1   :  { %v19_v0 = vld [vmem:[%s508_s0] sm:$0x7]  ;;  %325 = vset.pattern.permute.xlu1 %v350_v1  ;;  %324 = vset.pattern.permute.xlu0 %v350_v1  ;;  %v20_v2 = vld [vmem:[%s508_s0 + $0x4] sm:$0x7]  ;;  %v356_v16 = vmov 4   ;;  %v23_v21 = vlaneseq  ;;  %v408_v23 = vld [vmem:[%s509_s1 + $0x8] sm:$0xff] }
   0x2   :  { %43 = vrot.lane.b32.xlu0 %v19_v0, %s351_s20  ;;  %v400_v19 = vld [vmem:[%s509_s1] sm:$0xff]  ;;  %v56_v26 = vrot.slane %v408_v23, 6 }
   0x3   :  { %v55_v20 = vrot.slane %v400_v19, 6  ;;  %v414_v27 = vshrl.u32 %v23_v21, 7 }
   0x4   :  { %v60_v30 = vsub.f32 %v408_v23, %v56_v26 }
   0x5   :  { %v59_v25 = vsub.f32 %v400_v19, %v55_v20  ;;  %v73_v31 = vsub.s32 2, %v414_v27  ;;  %v421_v32 = vsub.s32 0, %v414_v27  ;;  %v113_v33 = vsub.s32 3, %v414_v27 }
   0x6   :  { %45 = vrot.lane.b32.xlu0 %v20_v2, %s351_s20  ;;  %v425_v34 = vsub.s32 1, %v414_v27  ;;  %v62_v42 = vadd.f32 1e-07, %v60_v30 }
   0x7   :  { %v61_v29 = vadd.f32 1e-07, %v59_v25  ;;  %v92_v36 = vrot.slane %v400_v19, %v421_v32  ;;  %v114_v37 = vrot.slane %v400_v19, %v113_v33  ;;  %v74_v38 = vrot.slane %v400_v19, %v73_v31 }
   0x8   :  { %v132_v39 = vrot.slane %v400_v19, %v425_v34  ;;  %v78_v47 = vrot.slane %v408_v23, %v73_v31  ;;  %v96_v48 = vrot.slane %v408_v23, %v421_v32  ;;  %v118_v49 = vrot.slane %v408_v23, %v113_v33 }
   0x9   :  { %v157_v41 = vrot.slane %v61_v29, 1  ;;  %v136_v50 = vrot.slane %v408_v23, %v425_v34  ;;  %v158_v55 = vrot.slane %v62_v42, 1 }
   0xa   :  { %64 = vperm.xlu0 %324, %v19_v0  }
   0xb   :  { %v161_v54 = vmul.f32 %v157_v41, %v59_v25  ;;  %v162_v61 = vmul.f32 %v158_v55, %v60_v30 }
   0xd   :  { %v176_v60 = vrot.slane %v161_v54, %v73_v31 }
   0xe   :  { %327 = vset.pattern.permute.xlu0 %v352_v3 }
   0xf   :  { %86 = vperm.xlu0 %327, %v20_v2  }
  0x13   :  { %329 = vset.pattern.permute.xlu0 %v353_v4 }
  0x14   :  { %122 = vperm.xlu0 %329, %v19_v0  }
  0x18   :  { %332 = vset.pattern.permute.xlu0 %v350_v1 }
  0x74   :  { %v44_v5 = vpop.permute.xlu0 %43 }
  0x75   :  { %v49_v6 = vsub.f32 %v19_v0, %v44_v5 }
  0x77   :  { %v51_v7 = vadd.f32 1e-07, %v49_v6 }
  0x78   :  { %v46_v8 = vpop.permute.xlu0 %45 }
  0x79   :  { %v50_v9 = vsub.f32 %v20_v2, %v46_v8  ;;  %147 = vrot.lane.b32.xlu1 %v51_v7, %s354_s23 }
  0x7b   :  { %v52_v10 = vadd.f32 1e-07, %v50_v9 }
  0x7d   :  { %149 = vrot.lane.b32.xlu1 %v52_v10, %s354_s23 }
  0x81   :  { %68 = vperm.xlu1 %325, %v20_v2  }
  0x85   :  { %326 = vset.pattern.permute.xlu1 %v352_v3 }
  0x86   :  { %82 = vperm.xlu1 %326, %v19_v0  }
  0x89   :  { %v403_v22 = vpop.permute.xlu0 %64 }
  0x8a   :  { %328 = vset.pattern.permute.xlu1 %v355_v11  ;;  %v79_v45 = vmin.f32 %v403_v22, %v74_v38 }
  0x8b   :  { %104 = vperm.xlu1 %328, %v19_v0  }
  0x8e   :  { %v416_v28 = vpop.permute.xlu0 %86 }
  0x8f   :  { %108 = vperm.xlu1 %328, %v20_v2   ;;  %v98_v53 = vmax.f32 %v416_v28, %v96_v48 }
  0x93   :  { %330 = vset.pattern.permute.xlu1 %v353_v4  ;;  %v435_v40 = vpop.permute.xlu0 %122  ;;  %v180_v4 = vrot.slane %v162_v61, %v73_v31 }
  0x94   :  { %126 = vperm.xlu1 %330, %v20_v2   ;;  %v137_v46 = vmax.f32 %v435_v40, %v132_v39  ;;  %v195_v11 = vmin.f32 %v435_v40, %v132_v39  ;;  %v208_v39 = vrot.slane %v408_v23, 2 }
  0x98   :  { %331 = vset.pattern.permute.xlu1 %v350_v1 }
  0xeb   :  { %v148_v12 = vpop.permute.xlu1 %147 }
  0xec   :  { %v153_v13 = vmul.f32 %v148_v12, %v49_v6  ;;  %v25_v12 = vsub.s32 4, %v414_v27 }
  0xee   :  { %165 = vperm.xlu1 %331, %v153_v13   ;;  %v26_v33 = vrot.slane %v400_v19, %v25_v12 }
  0xef   :  { %v150_v14 = vpop.permute.xlu1 %149 }
  0xf0   :  { %v154_v15 = vmul.f32 %v150_v14, %v50_v9  ;;  %v207_v14 = vrot.slane %v400_v19, 2 }
  0xf2   :  { %170 = vperm.xlu0 %332, %v154_v15   ;;  %333 = vset.pattern.permute.xlu1 %v356_v16  ;;  %v190_v16 = vmin.f32 %v416_v28, %v96_v48 }
  0xf3   :  { %33 = vperm.xlu1 %333, %v19_v0  }
  0xf7   :  { %38 = vperm.xlu1 %333, %v20_v2   ;;  %v187_v2 = vmax.f32 %v403_v22, %v74_v38  ;;  %v211_v38 = vadd.f32 %v207_v14, %v400_v19  ;;  %v280_v14 = vld [vmem:[%s511_s2 + $0x4] sm:$0x7] }
 0x100   :  { %v393_v17 = vpop.permute.xlu1 %68 }
 0x101   :  { %v80_v51 = vmin.f32 %v393_v17, %v78_v47  ;;  %v188_v29 = vmax.f32 %v393_v17, %v78_v47 }
 0x103   :  { %v100_v0 = vsub.f32 %v80_v51, %v98_v53  ;;  %v192_v42 = vsub.f32 %v188_v29, %v190_v16  ;;  %v228_v51 = vrot.slane %v211_v38, %v425_v34 }
 0x105   :  { %v395_v18 = vpop.permute.xlu1 %82  ;;  %v102_v6 = vmax.f32 %v100_v0, 0.0  ;;  %v200_v55 = vmul.f32 %v192_v42, %v192_v42  ;;  %v233_v61 = vsub.f32 %v228_v51, %v435_v40 }
 0x106   :  { %v97_v43 = vmax.f32 %v395_v18, %v92_v36  ;;  %v189_v9 = vmin.f32 %v395_v18, %v92_v36 }
 0x108   :  { %v99_v57 = vsub.f32 %v79_v45, %v97_v43  ;;  %v191_v30 = vsub.f32 %v187_v2, %v189_v9  ;;  %v271_v2 = vld [vmem:[%s510_s3] sm:$0x7] }
 0x109   :  { %vm273_vm0 = vcmp.gt.f32.partialorder %v271_v2, 0.0  ;;  %v279_v9 = vld [vmem:[%s511_s2] sm:$0x7] }
 0x10a   :  { %v410_v24 = vpop.permute.xlu1 %104  ;;  %v101_v62 = vmax.f32 %v99_v57, 0.0  ;;  %v199_v45 = vmul.f32 %v191_v30, %v191_v30 }
 0x10b   :  { %v119_v44 = vmin.f32 %v410_v24, %v114_v37  ;;  %v193_v10 = vmax.f32 %v410_v24, %v114_v37 }
 0x10d   :  { %v139_v59 = vsub.f32 %v119_v44, %v137_v46  ;;  %v197_v31 = vsub.f32 %v193_v10, %v195_v11  ;;  %v30_v44 = vrot.slane %v408_v23, %v25_v12  ;;  %v281_v12 = vsel %vm273_vm0, %v279_v9, 0.0 }
 0x10e   :  { %v427_v35 = vpop.permute.xlu1 %108  ;;  %vm289_vm2 = vcmp.eq.f32.partialorder %v281_v12, inf  ;;  %vm291_vm3 = vcmp.eq.f32.partialorder %v281_v12, 0.0 }
 0x10f   :  { %v120_v56 = vmin.f32 %v427_v35, %v118_v49  ;;  %v141_v1 = vmax.f32 %v139_v59, 0.0  ;;  %v194_v36 = vmax.f32 %v427_v35, %v118_v49  ;;  %v201_v47 = vmul.f32 %v197_v31, %v197_v31 }
 0x110   :  { %v216_v49 = vrot.slane %v211_v38, %v421_v32 }
 0x111   :  { %v143_v7 = vmul.f32 %v141_v1, %v101_v62 }
 0x113   :  { %v448_v52 = vpop.permute.xlu1 %126 }
 0x114   :  { %v138_v58 = vmax.f32 %v448_v52, %v136_v50  ;;  %v196_v27 = vmin.f32 %v448_v52, %v136_v50  ;;  %v212_v50 = vadd.f32 %v208_v39, %v408_v23 }
 0x116   :  { %v140_v63 = vsub.f32 %v120_v56, %v138_v58  ;;  %v198_v46 = vsub.f32 %v194_v36, %v196_v27  ;;  %v203_v56 = vadd.f32 %v201_v47, %v199_v45  ;;  %v221_v58 = vsub.f32 %v216_v49, %v395_v18 }
 0x117   :  { %v232_v59 = vrot.slane %v212_v50, %v425_v34 }
 0x118   :  { %v142_v5 = vmax.f32 %v140_v63, 0.0  ;;  %v202_v54 = vmul.f32 %v198_v46, %v198_v46  ;;  %v205_v1 = vadd.f32 1e-07, %v203_v56 }
 0x119   :  { %v234_v18 = vsub.f32 %v232_v59, %v448_v52 }
 0x11a   :  { %v144_v21 = vmul.f32 %v142_v5, %v102_v6  ;;  %v204_v23 = vadd.f32 %v202_v54, %v200_v55  ;;  %v223_v5 = vsub.f32 %v221_v58, %v403_v22  ;;  %v272_v22 = vld [vmem:[%s510_s3 + $0x4] sm:$0x7] }
 0x11b   :  { %vm274_vm1 = vcmp.gt.f32.partialorder %v272_v22, 0.0 }
 0x11c   :  { %v237_v10 = vmul.f32 %v223_v5, %v223_v5 }
 0x16d   :  { %v166_v3 = vpop.permute.xlu1 %165 }
 0x16e   :  { %v181_v8 = vadd.f32 %v176_v60, %v166_v3  ;;  %v220_v60 = vrot.slane %v212_v50, %v421_v32  ;;  %v235_v32 = vsub.f32 %v233_v61, %v410_v24 }
 0x170   :  { %v183_v13 = vsub.f32 %v181_v8, %v143_v7  ;;  %v222_v34 = vsub.f32 %v220_v60, %v416_v28  ;;  %v206_v8 = vadd.f32 1e-07, %v204_v23  ;;  %v236_v28 = vsub.f32 %v234_v18, %v427_v35 }
 0x171   :  { %v171_v15 = vpop.permute.xlu0 %170  ;;  %v239_v11 = vmul.f32 %v235_v32, %v235_v32 }
 0x172   :  { %v185_v20 = vadd.f32 1e-07, %v183_v13  ;;  %v182_v25 = vadd.f32 %v180_v4, %v171_v15  ;;  %v34_v26 = vpop.permute.xlu1 %33  ;;  %v224_v24 = vsub.f32 %v222_v34, %v393_v17  ;;  %v240_v15 = vmul.f32 %v236_v28, %v236_v28 }
 0x173   :  { %v41_v43 = vsub.f32 %v26_v33, %v34_v26 }
 0x174   :  { %334 = vrcp.f32 %v185_v20  ;;  %v184_v37 = vsub.f32 %v182_v25, %v144_v21  ;;  %v238_v16 = vmul.f32 %v224_v24, %v224_v24  ;;  %v241_v20 = vadd.f32 %v239_v11, %v237_v10 }
 0x175   :  { %v245_v53 = vmul.f32 0.40528473, %v41_v43 }
 0x176   :  { %v186_v41 = vadd.f32 1e-07, %v184_v37  ;;  %v39_v48 = vpop.permute.xlu1 %38  ;;  %v242_v25 = vadd.f32 %v240_v15, %v238_v16  ;;  %v243_v17 = vmul.f32 0.25, %v241_v20 }
 0x177   :  { %v42_v19 = vsub.f32 %v30_v44, %v39_v48  ;;  %v247_v63 = vmul.f32 %v245_v53, %v41_v43  ;;  %v292_v48 = vand.u32 2147483648, %v281_v12 }
 0x178   :  { %336 = vrcp.f32 %v186_v41  ;;  %v244_v31 = vmul.f32 0.25, %v242_v25 }
 0x179   :  { %v246_v0 = vmul.f32 0.40528473, %v42_v19  ;;  %338 = vrcp.f32 %v205_v1 }
 0x17e   :  { %v335_v57 = vpop.eup %334 }
 0x17f   :  { %v250_v62 = vmul.f32 %v335_v57, %v143_v7  ;;  %v248_v7 = vmul.f32 %v246_v0, %v42_v19 }
 0x181   :  { %v253_v3 = vsub.f32 %v247_v63, %v250_v62 }
 0x182   :  { %v337_v4 = vpop.eup %336 }
 0x183   :  { %v252_v40 = vmul.f32 %v337_v4, %v144_v21  ;;  %v255_v6 = vadd.f32 1.0000001, %v253_v3  ;;  %v282_v21 = vsel %vm274_vm1, %v280_v14, 0.0  ;;  %v339_v35 = vpop.eup %338 }
 0x184   :  { %v262_v33 = vmul.f32 %v339_v35, %v243_v17  ;;  %vm296_vm4 = vcmp.eq.f32.partialorder %v282_v21, inf  ;;  %v299_v57 = vand.u32 2147483648, %v282_v21  ;;  %vm298_vm5 = vcmp.eq.f32.partialorder %v282_v21, 0.0 }
 0x185   :  { %340 = vrcp.f32 %v255_v6  ;;  %v254_v52 = vsub.f32 %v248_v7, %v252_v40 }
 0x186   :  { %342 = vrcp.f32 %v206_v8 }
 0x187   :  { %v256_v13 = vadd.f32 1.0000001, %v254_v52 }
 0x189   :  { %344 = vrcp.f32 %v256_v13 }
 0x18a   :  { %346 = vrsqrt.f32 %v281_v12 }
 0x18b   :  { %348 = vrsqrt.f32 %v282_v21 }
 0x18f   :  { %v341_v26 = vpop.eup %340 }
 0x190   :  { %v258_v29 = vmul.f32 %v341_v26, %v247_v63  ;;  %v343_v30 = vpop.eup %342 }
 0x191   :  { %v264_v41 = vmul.f32 %v343_v30, %v244_v31 }
 0x192   :  { %v265_v36 = vmul.f32 %v258_v29, %v247_v63 }
 0x193   :  { %v345_v27 = vpop.eup %344 }
 0x194   :  { %v347_v37 = vpop.eup %346  ;;  %v267_v38 = vadd.f32 %v265_v36, %v262_v33  ;;  %v260_v39 = vmul.f32 %v345_v27, %v248_v7 }
 0x195   :  { %v288_v44 = vmul.f32 %v347_v37, %v281_v12  ;;  %v349_v45 = vpop.eup %348 }
 0x196   :  { %v269_v42 = vsub.f32 %v250_v62, %v267_v38  ;;  %v266_v43 = vmul.f32 %v260_v39, %v248_v7  ;;  %v295_v19 = vmul.f32 %v349_v45, %v282_v21 }
 0x197   :  { %v290_v51 = vsel %vm289_vm2, %v281_v12, %v288_v44 }
 0x198   :  { %v275_v46 = vmax.f32 %v269_v42, 0.0  ;;  %v268_v47 = vadd.f32 %v266_v43, %v264_v41  ;;  %v293_v56 = vsel %vm291_vm3, %v292_v48, %v290_v51  ;;  %v297_v60 = vsel %vm296_vm4, %v282_v21, %v295_v19 }
 0x199   :  { %v300_v0 = vsel %vm298_vm5, %v299_v57, %v297_v60 }
 0x19a   :  { %v277_v49 = vsel %vm273_vm0, %v275_v46, 0.0  ;;  %v270_v50 = vsub.f32 %v252_v40, %v268_v47 }
 0x19b   :  { %v283_v53 = vmul.f32 %v277_v49, %v277_v49  ;;  %285 = vst [vmem:[%s512_s4] sm:$0x7] %v277_v49 }
 0x19c   :  { %v276_v54 = vmax.f32 %v270_v50, 0.0 }
 0x19d   :  { %v301_v55 = vmul.f32 %v283_v53, %v283_v53 }
 0x19e   :  { %v278_v58 = vsel %vm274_vm1, %v276_v54, 0.0 }
 0x19f   :  { %v303_v59 = vmul.f32 %v301_v55, %v283_v53  ;;  %v284_v61 = vmul.f32 %v278_v58, %v278_v58  ;;  %286 = vst [vmem:[%s512_s4 + $0x4] sm:$0x7] %v278_v58 }
 0x1a1   :  { %v305_v62 = vmul.f32 %v303_v59, %v293_v56  ;;  %v302_v63 = vmul.f32 %v284_v61, %v284_v61 }
 0x1a3   :  { %307 = vst [vmem:[%s513_s5] sm:$0x7] %v305_v62  ;;  %v304_v23 = vmul.f32 %v302_v63, %v284_v61 }
 0x1a5   :  { %v306_v1 = vmul.f32 %v304_v23, %v300_v0 }
 0x1a7   :  { %308 = vst [vmem:[%s513_s5 + $0x4] sm:$0x7] %v306_v1 }

// kernel: _loss_core.5
= control target key start
LH: loop header
LB: loop body
LE: loop exit
PB: predicated region body
PF: predicated region fallthrough
CT: control target
= control target key end

     0   :  { %v52_v5 = vlaneseq  ;;  %s1056_s0 = inlined_call_operand.vmem [shape: f32[2,4,128], index: 0, kind: input, shape index: {}]   ;;  %s1057_s1 = inlined_call_operand.vmem [shape: f32[2,4,128], index: 1, kind: input, shape index: {}]   ;;  %s1058_s2 = inlined_call_operand.vmem [shape: f32[2,4,8,128], index: 2, kind: input, shape index: {}]   ;;  %s1059_s3 = inlined_call_operand.vmem [shape: f32[2,8,128], index: 3, kind: input, shape index: {}]   ;;  %s1060_s4 = inlined_call_operand.vmem [shape: f32[2,4,128], index: 4, kind: input, shape index: {}]   ;;  %s1061_s5 = inlined_call_operand.vmem [shape: f32[2,8,128], index: 5, kind: input, shape index: {}]   ;;  %s1062_s6 = inlined_call_operand.vmem [shape: f32[3], index: 6, kind: output, shape index: {}]  }
   0x1   :  { %v26_v0 = vld [vmem:[%s1056_s0] sm:$0xf]  ;;  %v27_v1 = vld [vmem:[%s1056_s0 + $0x4] sm:$0xf]  ;;  %v759_v12 = vld [vmem:[%s1061_s5 + $0x8] sm:$0xff] }
   0x2   :  { %v28_v2 = vld [vmem:[%s1057_s1] sm:$0xf]  ;;  %v29_v3 = vld [vmem:[%s1057_s1 + $0x4] sm:$0xf]  ;;  %v30_v4 = vmax.f32 %v26_v0, 0.0  ;;  %v31_v13 = vmax.f32 %v27_v1, 0.0 }
   0x3   :  { %v32_v6 = vmul.f32 %v28_v2, %v26_v0  ;;  %v36_v7 = vand.u32 2147483647, %v26_v0  ;;  %v37_v8 = vand.u32 2147483647, %v27_v1  ;;  %v748_v9 = vld [vmem:[%s1060_s4] sm:$0xf]  ;;  %v33_v14 = vmul.f32 %v29_v3, %v27_v1 }
   0x4   :  { %v299_v10 = vrot.slane %v748_v9, 4  ;;  %v754_v11 = vld [vmem:[%s1061_s5] sm:$0xff]  ;;  %v53_v17 = vshrl.u32 %v52_v5, 7  ;;  %v306_v25 = vrot.slane %v759_v12, 2 }
   0x5   :  { %v38_v15 = vsub.f32 0.0, %v36_v7  ;;  %v39_v16 = vsub.f32 0.0, %v37_v8  ;;  %v761_v18 = vsub.f32 %v30_v4, %v32_v6  ;;  %v766_v21 = vld [vmem:[%s1060_s4 + $0x4] sm:$0xf]  ;;  %v305_v24 = vrot.slane %v754_v11, 2 }
   0x6   :  { %v300_v22 = vrot.slane %v766_v21, 4  ;;  %v303_v23 = vsub.f32 %v754_v11, %v299_v10 }
   0x7   :  { %v40_v19 = vmul.f32 1.442695, %v38_v15  ;;  %v42_v20 = vmul.f32 1.442695, %v39_v16 }
   0x8   :  { %11 = vsyncpa [#allocation3], 0  ;;  %v772_v26 = vsub.f32 %v31_v13, %v33_v14  ;;  %v54_v27 = vsub.s32 6, %v53_v17  ;;  %v774_v28 = vcvt.s32.f32 %v53_v17  ;;  %v779_v29 = vld [vmem:[%s1059_s3] sm:$0xff]  ;;  %v784_v30 = vld [vmem:[%s1059_s3 + $0x8] sm:$0xff]  ;;  %v304_v31 = vsub.f32 %v759_v12, %v300_v22  ;;  %s647_s30 = sshll.u32 %s1062_s6, 4  ;;  %s648_s30 = int_to_ptr.vmem [resolvable:$true] %s647_s30 }
   0x9   :  { %663 = vpow2.f32 %v40_v19  ;;  %v309_v32 = vsub.f32 %v748_v9, %v305_v24  ;;  %v310_v33 = vsub.f32 %v766_v21, %v306_v25  ;;  %v789_v34 = vsub.s32 4, %v53_v17  ;;  %v288_v25 = vld [vmem:[%s1058_s2] sm:$0xff]  ;;  %s683_s8 = scalar_lea.vmem %s648_s30, 16  ;;  %p688_p1 = scmp.lt.s32.totalorder %s648_s30, %s648_s30 }
   0xa   :  { %665 = vpow2.f32 %v42_v20  ;;  %v791_v35 = vsub.s32 5, %v53_v17  ;;  %v793_v36 = vsub.s32 2, %v53_v17  ;;  %v311_v37 = vmax.f32 %v303_v23, 0.0  ;;  %p684_p0 = scmp.ne.s32.totalorder %s648_s30, %s683_s8  ;;  %p689_p2 = scmp.lt.s32.totalorder %s683_s8, %s683_s8 }
   0xb   :  { %v312_v38 = vmax.f32 %v304_v31, 0.0  ;;  %v453_v39 = vmax.f32 %v309_v32, 0.0  ;;  %v454_v40 = vmax.f32 %v310_v33, 0.0  ;;  %v91_v41 = vrot.slane %v779_v29, 6 }
   0xc   :  { %v797_v42 = vrot.slane %v754_v11, %v54_v27  ;;  %v799_v43 = vsub.s32 3, %v53_v17  ;;  %v313_v44 = vmin.f32 %v311_v37, 6.99  ;;  %v92_v45 = vrot.slane %v784_v30, 6  ;;  %p690_p3 = por %p689_p2, %p688_p1 }
   0xd   :  { %v314_v46 = vmin.f32 %v312_v38, 6.99  ;;  %v802_v47 = vmin.f32 %v453_v39, 6.99  ;;  %v804_v48 = vmin.f32 %v454_v40, 6.99  ;;  %v807_v49 = vsub.f32 %v779_v29, %v91_v41 }
   0xe   :  { %v810_v50 = vrot.slane %v759_v12, %v54_v27  ;;  %v315_v51 = vfloor.f32 %v313_v44  ;;  %v523_v52 = vrot.slane %v779_v29, 4  ;;  %v814_v53 = vsub.f32 %v784_v30, %v92_v45  ;;  %p691_p4 = pnand %p690_p3, %p684_p0 }
   0xf   :  { %v316_v54 = vfloor.f32 %v314_v46  ;;  %v524_v55 = vrot.slane %v784_v30, 4  ;;  %v101_v56 = vrot.slane %v748_v9, 6  ;;  %v102_v57 = vrot.slane %v766_v21, 6 }
  0x10   :  { %v317_v58 = vadd.f32 1.0, %v315_v51  ;;  %v326_v59 = vrot.slane %v315_v51, %v789_v34  ;;  %v821_v60 = vfloor.f32 %v802_v47  ;;  %v824_v61 = vfloor.f32 %v804_v48 }
  0x11   :  { %v318_v62 = vadd.f32 1.0, %v316_v54  ;;  %v330_v63 = vrot.slane %v316_v54, %v789_v34  ;;  %v390_v0 = vrot.slane %v315_v51, %v791_v35  ;;  %v829_v1 = vadd.f32 1e-07, %v807_v49 }
  0x12   :  { %v319_v3 = vsub.f32 %v317_v58, %v313_v44  ;;  %v346_v4 = vrot.slane %v317_v58, %v789_v34  ;;  %v394_v5 = vrot.slane %v316_v54, %v791_v35  ;;  %v834_v6 = vadd.f32 1e-07, %v814_v53 }
  0x13   :  { %v664_v2 = vpop.eup %663  ;;  %v320_v10 = vsub.f32 %v318_v62, %v314_v46  ;;  %vm331_vm0 = vcmp.eq.f32.partialorder %v774_v28, %v326_v59  ;;  %v350_v13 = vrot.slane %v318_v62, %v789_v34  ;;  %vm332_vm1 = vcmp.eq.f32.partialorder %v774_v28, %v330_v63 }
  0x14   :  { %v666_v7 = vpop.eup %665  ;;  %v44_v8 = vadd.f32 1.0, %v664_v2  ;;  %v321_v15 = vsub.f32 1.0, %v319_v3  ;;  %v336_v16 = vrot.slane %v319_v3, %v789_v34  ;;  %vm351_vm2 = vcmp.eq.f32.partialorder %v774_v28, %v346_v4  ;;  %v293_v2 = vld [vmem:[%s1058_s2 + $0x28] sm:$0xff] }
  0x15   :  { %v45_v14 = vadd.f32 1.0, %v666_v7  ;;  %v322_v17 = vsub.f32 1.0, %v320_v10  ;;  %v340_v19 = vrot.slane %v320_v10, %v789_v34  ;;  %vm352_vm3 = vcmp.eq.f32.partialorder %v774_v28, %v350_v13 }
  0x16   :  { %667 = vlog2.f32 %v44_v8  ;;  %v341_v20 = vsel %vm331_vm0, %v336_v16, 0.0  ;;  %v356_v22 = vrot.slane %v321_v15, %v789_v34  ;;  %vm395_vm4 = vcmp.eq.f32.partialorder %v774_v28, %v390_v0 }
  0x17   :  { %669 = vlog2.f32 %v45_v14  ;;  %v342_v23 = vsel %vm332_vm1, %v340_v19, 0.0  ;;  %v360_v24 = vrot.slane %v322_v17, %v789_v34  ;;  %vm396_vm5 = vcmp.eq.f32.partialorder %v774_v28, %v394_v5  ;;  %v292_v34 = vld [vmem:[%s1058_s2 + $0x20] sm:$0xff] }
  0x18   :  { %v361_v27 = vsel %vm351_vm2, %v356_v22, 0.0  ;;  %v400_v31 = vrot.slane %v319_v3, %v791_v35  ;;  %v404_v32 = vrot.slane %v320_v10, %v791_v35  ;;  %v853_v33 = vadd.f32 1.0, %v821_v60 }
  0x19   :  { %v362_v37 = vsel %vm352_vm3, %v360_v24, 0.0  ;;  %v363_v38 = vadd.f32 %v361_v27, %v341_v20  ;;  %v379_v39 = vadd.f32 %v321_v15, %v319_v3  ;;  %v410_v40 = vrot.slane %v317_v58, %v791_v35 }
  0x1a   :  { %v364_v41 = vadd.f32 %v362_v37, %v342_v23  ;;  %v405_v44 = vsel %vm395_vm4, %v400_v31, 0.0  ;;  %v406_v45 = vsel %vm396_vm5, %v404_v32, 0.0  ;;  %v414_v46 = vrot.slane %v318_v62, %v791_v35  ;;  %v289_v62 = vld [vmem:[%s1058_s2 + $0x8] sm:$0xff] }
  0x1b   :  { %vm62_vm6 = vcmask 1043456   ;;  %v365_v51 = vmul.f32 %v363_v38, %v288_v25  ;;  %vm415_vm7 = vcmp.eq.f32.partialorder %v774_v28, %v410_v40  ;;  %v420_v54 = vrot.slane %v321_v15, %v791_v35 }
  0x1c   :  { %v424_v59 = vrot.slane %v322_v17, %v791_v35  ;;  %v366_v63 = vmul.f32 %v364_v41, %v292_v34  ;;  %vm416_vm8 = vcmp.eq.f32.partialorder %v774_v28, %v414_v46  ;;  %v865_v0 = vadd.f32 1.0, %v824_v61 }
  0x1d   :  { %v869_v58 = vsub.f32 %v853_v33, %v802_v47  ;;  %v367_v3 = vrot.slane %v365_v51, 4  ;;  %v425_v35 = vsel %vm415_vm7, %v420_v54, 0.0  ;;  %v468_v5 = vrot.slane %v821_v60, %v793_v36 }
  0x1e   :  { %v426_v4 = vsel %vm416_vm8, %v424_v59, 0.0  ;;  %v373_v7 = vrot.slane %v366_v63, 4  ;;  %v380_v8 = vadd.f32 %v322_v17, %v320_v10  ;;  %v427_v13 = vadd.f32 %v425_v35, %v405_v44 }
  0x1f   :  { %v428_v14 = vadd.f32 %v426_v4, %v406_v45  ;;  %v368_v15 = vadd.f32 %v367_v3, %v365_v51  ;;  %v880_v16 = vmul.f32 %v379_v39, %v779_v29  ;;  %v884_v19 = vsub.f32 %v865_v0, %v804_v48 }
  0x20   :  { %v668_v47 = vpop.eup %667  ;;  %v887_v20 = vsub.f32 1.0, %v869_v58  ;;  %v374_v24 = vadd.f32 %v373_v7, %v366_v63  ;;  %v429_v25 = vmul.f32 %v427_v13, %v289_v62  ;;  %v472_v31 = vrot.slane %v824_v61, %v793_v36 }
  0x21   :  { %v670_v22 = vpop.eup %669  ;;  %v47_v23 = vmul.f32 0.6931472, %v668_v47  ;;  %v430_v27 = vmul.f32 %v428_v14, %v293_v2  ;;  %v369_v17 = vrot.slane %v368_v15, 2  ;;  %vm892_vm9 = vcmp.eq.f32.partialorder %v774_v28, %v468_v5 }
  0x22   :  { %v49_v10 = vmul.f32 0.6931472, %v670_v22  ;;  %v375_v34 = vrot.slane %v374_v24, 2  ;;  %v431_v37 = vrot.slane %v429_v25, 4  ;;  %v478_v41 = vrot.slane %v869_v58, %v793_v36 }
  0x23   :  { %v50_v48 = vadd.f32 %v47_v23, %v761_v18  ;;  %v437_v38 = vrot.slane %v430_v27, 4  ;;  %v370_v40 = vadd.f32 %v369_v17, %v368_v15  ;;  %v482_v44 = vrot.slane %v884_v19, %v793_v36 }
  0x24   :  { %v51_v39 = vadd.f32 %v49_v10, %v772_v26  ;;  %v376_v46 = vadd.f32 %v375_v34, %v374_v24  ;;  %v432_v51 = vadd.f32 %v431_v37, %v429_v25  ;;  %v905_v63 = vsub.f32 1.0, %v884_v19 }
  0x25   :  { %v60_v45 = vmul.f32 %v797_v42, %v50_v48  ;;  %v438_v54 = vadd.f32 %v437_v38, %v430_v27  ;;  %v371_v18 = vrot.slane %v370_v40, 1  ;;  %vm474_vm10 = vcmp.eq.f32.partialorder %v774_v28, %v472_v31  ;;  %v290_v27 = vld [vmem:[%s1058_s2 + $0x10] sm:$0xff] }
  0x26   :  { %v61_v59 = vmul.f32 %v810_v50, %v51_v39  ;;  %v377_v62 = vrot.slane %v376_v46, 1  ;;  %v433_v2 = vrot.slane %v432_v51, 2  ;;  %v483_v42 = vsel %vm892_vm9, %v478_v41, 0.0  ;;  %v294_v48 = vld [vmem:[%s1058_s2 + $0x30] sm:$0xff] }
  0x27   :  { %v63_v26 = vsel %vm62_vm6, %v60_v45, 0.0  ;;  %v439_v3 = vrot.slane %v438_v54, 2  ;;  %v488_v4 = vrot.slane %v853_v33, %v793_v36  ;;  %v492_v50 = vrot.slane %v865_v0, %v793_v36 }
  0x28   :  { %v64_v35 = vsel %vm62_vm6, %v61_v59, 0.0  ;;  %v434_v7 = vadd.f32 %v433_v2, %v432_v51  ;;  %v484_v14 = vsel %vm474_vm10, %v482_v44, 0.0  ;;  %v916_v47 = vadd.f32 %v371_v18, %v370_v40 }
  0x29   :  { %v65_v5 = vadd.f32 %v64_v35, %v63_v26  ;;  %v440_v13 = vadd.f32 %v439_v3, %v438_v54  ;;  %vm493_vm11 = vcmp.eq.f32.partialorder %v774_v28, %v488_v4  ;;  %vm494_vm12 = vcmp.eq.f32.partialorder %v774_v28, %v492_v50 }
  0x2a   :  { %v498_v15 = vrot.slane %v887_v20, %v793_v36  ;;  %v922_v22 = vadd.f32 %v377_v62, %v376_v46  ;;  %v435_v23 = vrot.slane %v434_v7, 1  ;;  %v502_v25 = vrot.slane %v905_v63, %v793_v36 }
  0x2b   :  { %66 = vadd.xlane.f32.xlu0 %v65_v5  ;;  %v441_v24 = vrot.slane %v440_v13, 1  ;;  %v930_v10 = vmul.f32 %v380_v8, %v784_v30  ;;  %v521_v31 = vadd.f32 %v887_v20, %v869_v58  ;;  %v542_v32 = vrot.slane %v821_v60, %v799_v43 }
  0x2c   :  { %v503_v17 = vsel %vm493_vm11, %v498_v15, 0.0  ;;  %v436_v34 = vadd.f32 %v435_v23, %v434_v7  ;;  %v504_v37 = vsel %vm494_vm12, %v502_v25, 0.0  ;;  %v383_v39 = vsub.f32 %v880_v16, %v916_v47 }
  0x2d   :  { %v442_v36 = vadd.f32 %v441_v24, %v440_v13  ;;  %v505_v38 = vadd.f32 %v503_v17, %v483_v42  ;;  %v506_v8 = vadd.f32 %v504_v37, %v484_v14  ;;  %v522_v40 = vadd.f32 %v905_v63, %v884_v19 }
  0x2e   :  { %v546_v41 = vrot.slane %v824_v61, %v799_v43  ;;  %v384_v60 = vsub.f32 %v930_v10, %v922_v22  ;;  %v443_v44 = vsub.f32 %v880_v16, %v436_v34  ;;  %vm547_vm13 = vcmp.eq.f32.partialorder %v774_v28, %v542_v32 }
  0x2f   :  { %v507_v45 = vmul.f32 %v505_v38, %v290_v27  ;;  %v508_v46 = vmul.f32 %v506_v8, %v294_v48  ;;  %v552_v51 = vrot.slane %v869_v58, %v799_v43  ;;  %v556_v54 = vrot.slane %v884_v19, %v799_v43 }
  0x30   :  { %vm548_vm14 = vcmp.eq.f32.partialorder %v774_v28, %v546_v41  ;;  %v444_v59 = vsub.f32 %v930_v10, %v442_v36  ;;  %v957_v18 = vmul.f32 %v523_v52, %v521_v31  ;;  %v562_v26 = vrot.slane %v853_v33, %v799_v43 }
  0x31   :  { %v509_v61 = vrot.slane %v507_v45, 4  ;;  %v447_v62 = vrot.slane %v443_v44, 1  ;;  %v515_v2 = vrot.slane %v508_v46, 4  ;;  %v963_v3 = vmul.f32 %v524_v55, %v522_v40 }
  0x32   :  { %v566_v58 = vrot.slane %v865_v0, %v799_v43  ;;  %v557_v35 = vsel %vm547_vm13, %v552_v51, 0.0  ;;  %v558_v42 = vsel %vm548_vm14, %v556_v54, 0.0  ;;  %vm567_vm15 = vcmp.eq.f32.partialorder %v774_v28, %v562_v26 }
  0x33   :  { %v510_v19 = vadd.f32 %v509_v61, %v507_v45  ;;  %v516_v4 = vadd.f32 %v515_v2, %v508_v46  ;;  %v572_v52 = vrot.slane %v887_v20, %v799_v43  ;;  %v576_v33 = vrot.slane %v905_v63, %v799_v43  ;;  %v295_v20 = vld [vmem:[%s1058_s2 + $0x38] sm:$0xff] }
  0x34   :  { %vm568_vm0 = vcmp.eq.f32.partialorder %v774_v28, %v566_v58  ;;  %v448_v50 = vrot.slane %v444_v59, 1  ;;  %v105_v0 = vsub.f32 %v748_v9, %v101_v56  ;;  %v106_v5 = vsub.f32 %v766_v21, %v102_v57  ;;  %v291_v28 = vld [vmem:[%s1058_s2 + $0x18] sm:$0xff] }
  0x35   :  { %v511_v55 = vrot.slane %v510_v19, 2  ;;  %v517_v7 = vrot.slane %v516_v4, 2  ;;  %v577_v43 = vsel %vm567_vm15, %v572_v52, 0.0  ;;  %v578_v63 = vsel %vm568_vm0, %v576_v33, 0.0 }
  0x36   :  { %v987_v13 = vmin.f32 %v779_v29, %v748_v9  ;;  %v579_v14 = vadd.f32 %v577_v43, %v557_v35  ;;  %v580_v15 = vadd.f32 %v578_v63, %v558_v42  ;;  %v991_v57 = vmin.f32 %v784_v30, %v766_v21 }
  0x37   :  { %v512_v56 = vadd.f32 %v511_v55, %v510_v19  ;;  %v518_v23 = vadd.f32 %v517_v7, %v516_v4  ;;  %v107_v24 = vadd.f32 1e-07, %v105_v0  ;;  %v111_v25 = vmax.f32 %v779_v29, %v748_v9 }
  0x38   :  { %v112_v27 = vmax.f32 %v784_v30, %v766_v21  ;;  %v581_v31 = vmul.f32 %v579_v14, %v291_v28  ;;  %v582_v32 = vmul.f32 %v580_v15, %v295_v20  ;;  %v133_v48 = vrot.slane %v829_v1, 1 }
  0x39   :  { %v513_v17 = vrot.slane %v512_v56, 1  ;;  %v519_v34 = vrot.slane %v518_v23, 1  ;;  %v108_v36 = vadd.f32 1e-07, %v106_v5  ;;  %v115_v37 = vrot.slane %v111_v25, 6 }
  0x3a   :  { %v116_v38 = vrot.slane %v112_v27, 6  ;;  %v583_v40 = vrot.slane %v581_v31, 4  ;;  %v589_v41 = vrot.slane %v582_v32, 4  ;;  %v134_v44 = vrot.slane %v834_v6, 1 }
  0x3b   :  { %v514_v8 = vadd.f32 %v513_v17, %v512_v56  ;;  %v520_v45 = vadd.f32 %v519_v34, %v518_v23  ;;  %v119_v46 = vsub.f32 %v987_v13, %v115_v37  ;;  %v137_v54 = vmul.f32 %v133_v48, %v807_v49 }
  0x3c   :  { %v120_v51 = vsub.f32 %v991_v57, %v116_v38  ;;  %v584_v61 = vadd.f32 %v583_v40, %v581_v31  ;;  %v590_v1 = vadd.f32 %v589_v41, %v582_v32  ;;  %v141_v26 = vrot.slane %v107_v24, 1 }
  0x3d   :  { %v529_v59 = vsub.f32 %v957_v18, %v514_v8  ;;  %v530_v2 = vsub.f32 %v963_v3, %v520_v45  ;;  %v121_v58 = vmax.f32 %v119_v46, 0.0  ;;  %v142_v35 = vrot.slane %v108_v36, 1 }
  0x3e   :  { %v122_v19 = vmax.f32 %v120_v51, 0.0  ;;  %v585_v42 = vrot.slane %v584_v61, 2  ;;  %v591_v4 = vrot.slane %v590_v1, 2  ;;  %v138_v6 = vmul.f32 %v134_v44, %v814_v53 }
  0x3f   :  { %v145_v52 = vmul.f32 %v141_v26, %v105_v0  ;;  %v125_v33 = vrot.slane %v121_v58, 1  ;;  %v146_v28 = vmul.f32 %v142_v35, %v106_v5  ;;  %v451_v49 = vadd.f32 %v447_v62, %v383_v39 }
  0x40   :  { %v126_v55 = vrot.slane %v122_v19, 1  ;;  %v452_v20 = vadd.f32 %v448_v50, %v384_v60  ;;  %v586_v7 = vadd.f32 %v585_v42, %v584_v61  ;;  %v592_v43 = vadd.f32 %v591_v4, %v590_v1 }
  0x41   :  { %v533_v63 = vrot.slane %v529_v59, 6  ;;  %v534_v56 = vrot.slane %v530_v2, 6  ;;  %v1011_v14 = vmul.f32 %v125_v33, %v121_v58  ;;  %v147_v15 = vadd.f32 %v145_v52, %v137_v54 }
  0x42   :  { %v587_v53 = vrot.slane %v586_v7, 1  ;;  %v593_v0 = vrot.slane %v592_v43, 1  ;;  %v1013_v23 = vmul.f32 %v126_v55, %v122_v19  ;;  %v148_v5 = vadd.f32 %v146_v28, %v138_v6 }
  0x43   :  { %v155_v16 = vrot.slane %v987_v13, 6  ;;  %v537_v47 = vadd.f32 %v533_v63, %v451_v49  ;;  %v149_v22 = vsub.f32 %v147_v15, %v1011_v14  ;;  %v156_v10 = vrot.slane %v991_v57, 6 }
  0x44   :  { %v588_v24 = vadd.f32 %v587_v53, %v586_v7  ;;  %v594_v17 = vadd.f32 %v593_v0, %v592_v43  ;;  %v538_v39 = vadd.f32 %v534_v56, %v452_v20  ;;  %v150_v50 = vsub.f32 %v148_v5, %v1013_v23 }
  0x45   :  { %v159_v48 = vsub.f32 %v111_v25, %v155_v16  ;;  %v607_v34 = vrot.slane %v754_v11, 4  ;;  %v151_v36 = vadd.f32 1e-07, %v149_v22  ;;  %v160_v37 = vsub.f32 %v112_v27, %v156_v10 }
  0x46   :  { %v595_v60 = vsub.f32 %v957_v18, %v588_v24  ;;  %v596_v62 = vsub.f32 %v963_v3, %v594_v17  ;;  %v608_v8 = vrot.slane %v759_v12, 4  ;;  %v152_v40 = vadd.f32 1e-07, %v150_v50 }
  0x47   :  { %v83_v57 = vrot.slane %v754_v11, 7  ;;  %v161_v44 = vmul.f32 %v159_v48, %v159_v48  ;;  %v173_v3 = vrot.slane %v748_v9, 2  ;;  %v84_v45 = vrot.slane %v759_v12, 7 }
  0x48   :  { %v599_v31 = vrot.slane %v595_v60, 7  ;;  %v600_v32 = vrot.slane %v596_v62, 7  ;;  %v162_v46 = vmul.f32 %v160_v37, %v160_v37  ;;  %671 = vrcp.f32 %v151_v36 }
  0x49   :  { %v174_v27 = vrot.slane %v766_v21, 2  ;;  %673 = vrcp.f32 %v152_v40  ;;  %vm249_vm1 = vcmp.gt.f32.partialorder %v754_v11, 0.0  ;;  %vm250_vm2 = vcmp.gt.f32.partialorder %v759_v12, 0.0 }
  0x4a   :  { %v603_v13 = vadd.f32 %v599_v31, %v537_v47  ;;  %v604_v38 = vadd.f32 %v600_v32, %v538_v39  ;;  %v87_v54 = vsub.f32 %v754_v11, %v83_v57  ;;  %v165_v1 = vrot.slane %v161_v44, 1 }
  0x4b   :  { %v177_v26 = vadd.f32 %v173_v3, %v748_v9  ;;  %v88_v2 = vsub.f32 %v759_v12, %v84_v45  ;;  %v166_v58 = vrot.slane %v162_v46, 1  ;;  %vm273_vm3 = vcmask 1040384  }
  0x4c   :  { %v605_v41 = vmul.f32 0.25, %v603_v13  ;;  %v606_v18 = vmul.f32 0.25, %v604_v38  ;;  %v178_v42 = vadd.f32 %v174_v27, %v766_v21  ;;  %v169_v52 = vadd.f32 %v165_v1, %v161_v44 }
  0x4d   :  { %v179_v33 = vsub.f32 %v177_v26, %v779_v29  ;;  %v181_v55 = vrot.slane %v779_v29, 2  ;;  %v199_v9 = vmul.f32 0.40528473, %v87_v54  ;;  %v170_v20 = vadd.f32 %v166_v58, %v162_v46 }
  0x4e   :  { %v611_v25 = vmul.f32 %v607_v34, %v605_v41  ;;  %v612_v51 = vmul.f32 %v608_v8, %v606_v18  ;;  %v200_v7 = vmul.f32 0.40528473, %v88_v2  ;;  %v180_v63 = vsub.f32 %v178_v42, %v784_v30 }
  0x4f   :  { %v182_v56 = vrot.slane %v784_v30, 2  ;;  %v171_v53 = vadd.f32 1e-07, %v169_v52  ;;  %v201_v0 = vmul.f32 %v199_v9, %v87_v54  ;;  %v172_v29 = vadd.f32 1e-07, %v170_v20 }
  0x50   :  { %v615_v59 = vrot.slane %v611_v25, 3  ;;  %v616_v61 = vrot.slane %v612_v51, 3  ;;  %v185_v24 = vsub.f32 %v179_v33, %v181_v55  ;;  %v202_v17 = vmul.f32 %v200_v7, %v88_v2 }
  0x51   :  { %v186_v47 = vsub.f32 %v180_v63, %v182_v56  ;;  %675 = vrcp.f32 %v171_v53  ;;  %v253_v26 = vrot.slane %v754_v11, 6  ;;  %v254_v58 = vrot.slane %v759_v12, 6 }
  0x52   :  { %v619_v19 = vsel %vm249_vm1, %v615_v59, 0.0  ;;  %v620_v35 = vsel %vm250_vm2, %v616_v61, 0.0  ;;  %v672_v21 = vpop.eup %671  ;;  %v187_v60 = vmul.f32 %v185_v24, %v185_v24  ;;  %677 = vrcp.f32 %v172_v29 }
  0x53   :  { %v623_v4 = vrot.slane %v619_v19, 1  ;;  %v624_v6 = vrot.slane %v620_v35, 1  ;;  %v674_v15 = vpop.eup %673  ;;  %v205_v5 = vmul.f32 %v672_v21, %v1011_v14  ;;  %v188_v30 = vmul.f32 %v186_v47, %v186_v47 }
  0x54   :  { %v206_v16 = vmul.f32 %v674_v15, %v1013_v23  ;;  %v191_v32 = vrot.slane %v187_v60, 1 }
  0x55   :  { %v627_v28 = vsel %vm273_vm3, %v623_v4, 0.0  ;;  %v628_v49 = vsel %vm273_vm3, %v624_v6, 0.0  ;;  %v209_v22 = vrot.slane %v205_v5, 7  ;;  %v192_v14 = vrot.slane %v188_v30, 1 }
  0x56   :  { %v629_v43 = vadd.f32 %v628_v49, %v627_v28  ;;  %v210_v10 = vrot.slane %v206_v16, 7  ;;  %v195_v48 = vadd.f32 %v191_v32, %v187_v60 }
  0x57   :  { %v213_v39 = vsub.f32 %v201_v0, %v209_v22  ;;  %v196_v36 = vadd.f32 %v192_v14, %v188_v30 }
  0x58   :  { %630 = vadd.xlane.f32.xlu1 %v629_v43  ;;  %v214_v62 = vsub.f32 %v202_v17, %v210_v10  ;;  %v197_v23 = vmul.f32 0.25, %v195_v48 }
  0x59   :  { %v215_v50 = vadd.f32 1.0000001, %v213_v39  ;;  %v198_v8 = vmul.f32 0.25, %v196_v36 }
  0x5a   :  { %v216_v31 = vadd.f32 1.0000001, %v214_v62 }
  0x5b   :  { %679 = vrcp.f32 %v215_v50  ;;  %v676_v34 = vpop.eup %675 }
  0x5c   :  { %681 = vrcp.f32 %v216_v31  ;;  %v678_v37 = vpop.eup %677  ;;  %v225_v13 = vrot.slane %v676_v34, 2 }
  0x5d   :  { %v226_v40 = vrot.slane %v678_v37, 2 }
  0x5e   :  { %v229_v44 = vmul.f32 %v225_v13, %v197_v23 }
  0x5f   :  { %v230_v45 = vmul.f32 %v226_v40, %v198_v8 }
  0x65   :  { %v680_v38 = vpop.eup %679 }
  0x66   :  { %v682_v57 = vpop.eup %681  ;;  %v219_v41 = vmul.f32 %v680_v38, %v201_v0 }
  0x67   :  { %v220_v18 = vmul.f32 %v682_v57, %v202_v17 }
  0x68   :  { %v231_v3 = vmul.f32 %v219_v41, %v201_v0 }
  0x69   :  { %v232_v46 = vmul.f32 %v220_v18, %v202_v17 }
  0x6a   :  { %v235_v25 = vrot.slane %v231_v3, 3 }
  0x6b   :  { %v236_v51 = vrot.slane %v232_v46, 3 }
  0x6c   :  { %v239_v27 = vadd.f32 %v235_v25, %v229_v44 }
  0x6d   :  { %v240_v54 = vadd.f32 %v236_v51, %v230_v45 }
  0x6e   :  { %v243_v59 = vrot.slane %v239_v27, 6 }
  0x6f   :  { %v244_v61 = vrot.slane %v240_v54, 6 }
  0x70   :  { %v247_v1 = vsub.f32 %v205_v5, %v243_v59 }
  0x71   :  { %v248_v2 = vsub.f32 %v206_v16, %v244_v61 }
  0x72   :  { %v251_v19 = vsub.f32 1.0, %v247_v1 }
  0x73   :  { %v252_v35 = vsub.f32 1.0, %v248_v2 }
  0x74   :  { %v257_v42 = vmul.f32 %v253_v26, %v251_v19 }
  0x75   :  { %v258_v4 = vmul.f32 %v254_v58, %v252_v35 }
  0x76   :  { %v261_v6 = vrot.slane %v257_v42, 1 }
  0x77   :  { %v262_v52 = vrot.slane %v258_v4, 1 }
  0x78   :  { %v265_v33 = vsel %vm249_vm1, %v261_v6, 0.0 }
  0x79   :  { %v266_v55 = vsel %vm250_vm2, %v262_v52, 0.0  ;;  %v269_v9 = vrot.slane %v265_v33, 1 }
  0x7a   :  { %v270_v28 = vrot.slane %v266_v55, 1 }
  0x7b   :  { %v274_v49 = vsel %vm273_vm3, %v269_v9, 0.0 }
  0x7c   :  { %v275_v20 = vsel %vm273_vm3, %v270_v28, 0.0 }
  0x7d   :  { %v276_v7 = vadd.f32 %v275_v20, %v274_v49 }
  0x7f   :  { %277 = vadd.xlane.f32.xlu0 %v276_v7 }
  0xb8   :  { %v67_v43 = vpop.xlane.xlu0 %66 }
  0xb9   :  { %v68_v63 = vrot.slane %v67_v43, 4 }
  0xbb   :  { %v69_v56 = vadd.f32 %v68_v63, %v67_v43 }
  0xbd   :  { %v70_v21 = vrot.slane %v69_v56, 2 }
  0xbf   :  { %v71_v15 = vadd.f32 %v70_v21, %v69_v56 }
  0xc1   :  { %v72_v53 = vrot.slane %v71_v15, 1 }
  0xc3   :  { %v73_v0 = vadd.f32 %v72_v53, %v71_v15 }
  0xc5   :  { %656 = vpush %v73_v0 }
  0xe5   :  { %v631_v11 = vpop.xlane.xlu1 %630 }
  0xe6   :  { %v632_v12 = vrot.slane %v631_v11, 4 }
  0xe8   :  { %v633_v5 = vadd.f32 %v632_v12, %v631_v11 }
  0xea   :  { %v634_v29 = vrot.slane %v633_v5, 2 }
  0xec   :  { %v635_v47 = vadd.f32 %v634_v29, %v633_v5 }
  0xee   :  { %v636_v39 = vrot.slane %v635_v47, 1 }
  0xf0   :  { %v637_v30 = vadd.f32 %v636_v39, %v635_v47 }
  0xf6   :  { %s657_s2 = spop %656 }
  0xf7   :  { %76 = sst [smem:[#allocation2]] %s657_s2 }
 0x10c   :  { %v278_v24 = vpop.xlane.xlu0 %277 }
 0x10d   :  { %v279_v17 = vrot.slane %v278_v24, 4 }
 0x10f   :  { %v280_v16 = vadd.f32 %v279_v17, %v278_v24 }
 0x111   :  { %v281_v22 = vrot.slane %v280_v16, 2 }
 0x113   :  { %v282_v10 = vadd.f32 %v281_v22, %v280_v16 }
 0x115   :  { %v283_v60 = vrot.slane %v282_v10, 1 }
 0x117   :  { %v284_v62 = vadd.f32 %v283_v60, %v282_v10 }
 0x119   :  { %658 = vpush %v284_v62 }
 0x11a   :  { %660 = vpush %v637_v30 }
 0x14a   :  { %s659_s0 = spop %658 }
 0x14b   :  { %287 = sst [smem:[#allocation2 + $0x1]] %s659_s0  ;;  %s661_s7 = spop %660 }
 0x14c   :  { %640 = sst [smem:[#allocation2 + $0x2]] %s661_s7 }
 0x14d   :  { %694 = shalt.err (!%p691_p4)
}
 0x14e   :  { %s697_s9 = smov [#allocation2]  }
 0x14f   :  { %650 = dma.smem_to_vmem %s697_s9, 16, %s648_s30, [#allocation3]  }
 0x150   :  { %695 = dma.done.wait [#allocation3], 16  }
 0x151   :  { %696 = vsyncadd [#allocation3], 4294967280 }
 0x152   :  { %654 = sfence }
 0x153   :  { %655 = vsyncpa [#allocation3], 1 }

</bundles_post_ra>
